<compile_context>
chip_gen: v5e
topology: v5e:2x2
jax: 0.10.0
libtpu: 0.0.40
codegen_flags: <defaults>
</compile_context>

<pallas_src>
import functools

import jax
import jax.numpy as jnp
from jax.experimental import pallas as pl
from jax.experimental.pallas import tpu as pltpu


def _conv_kernel(x_ref, w_ref, b_ref, o_ref, *, nb, cin, cout, h, w, kh, kw, oh, ow):
    """Direct VALID conv as scalar-broadcast VPU FMAs over flat lane-shifted planes.

    x_ref : (N*Cin, H*W)          VMEM  (batch-major rows, spatial on lanes)
    w_ref : (Cout*Cin*KH*KW,)     SMEM  (flat OIHW scalars)
    b_ref : (Cout,)               SMEM
    o_ref : (N, Cout, OH*OW)      VMEM  (lane-dense, valid region only)
    """
    hw = h * w
    # Widest lane span any valid output position needs; max tap shift + acc_w == hw,
    # so every shifted slice stays in bounds with NO input padding.
    acc_w = (oh - 1) * w + ow

    xp = x_ref[...].astype(jnp.float32)                      # (N*Cin, H*W)

    # Fold the batch onto sublanes: one (N, H*W) slab per input channel (hoisted,
    # done once — plain row slices + a sublane concat).
    xch = []
    for ci in range(cin):
        rows = [xp[nn * cin + ci:nn * cin + ci + 1, :] for nn in range(nb)]
        xch.append(rows[0] if nb == 1 else jnp.concatenate(rows, axis=0))

    # Cout*Cin independent accumulation chains (ILP); bias folded in afterwards.
    parts = [[None] * cin for _ in range(cout)]
    for ci in range(cin):
        xc = xch[ci]                                          # (N, H*W)
        for i in range(kh):
            for j in range(kw):
                s = i * w + j
                xs = xc[:, s:s + acc_w]                       # flat lane shift only
                for co in range(cout):
                    wk = w_ref[((co * cin + ci) * kh + i) * kw + j]   # SMEM scalar
                    p = wk * xs                               # scalar x vector FMA
                    parts[co][ci] = p if parts[co][ci] is None else parts[co][ci] + p

    # Reduce partials, add bias, compact the valid OHxOW rows into the lane-dense
    # output (static slices + sub-tile stores; no post-kernel XLA slice needed).
    for co in range(cout):
        acc = parts[co][0]
        for ci in range(1, cin):
            acc = acc + parts[co][ci]
        acc = acc + b_ref[co]                                 # (N, acc_w) f32
        for r in range(oh):
            o_ref[:, co, r * ow:(r + 1) * ow] = (
                acc[:, r * w:r * w + ow].astype(o_ref.dtype))


def conv2d_pallas(x_nchw, weight, bias):
    """Equivalent of nn.Conv2d(3, 3, kernel_size=3, stride=1, padding=0).

    x_nchw : (N, Cin, H, W)
    weight : (Cout, Cin, KH, KW)   (PyTorch OIHW convention)
    bias   : (Cout,)
    returns: (N, Cout, OH, OW)
    """
    n, cin, h, w = x_nchw.shape
    cout, cin_w, kh, kw = weight.shape
    assert cin == cin_w
    oh, ow = h - kh + 1, w - kw + 1

    # Layout plumbing only: contiguous reshapes (bitcasts). No pad, no transpose.
    x_flat = x_nchw.reshape(n * cin, h * w)     # batch-major rows, spatial on lanes
    w_flat = weight.reshape(-1)                 # flat OIHW scalars -> SMEM
    b_flat = bias.reshape(-1)

    kernel = functools.partial(
        _conv_kernel, nb=n, cin=cin, cout=cout, h=h, w=w, kh=kh, kw=kw, oh=oh, ow=ow
    )

    out = pl.pallas_call(
        kernel,
        out_shape=jax.ShapeDtypeStruct((n, cout, oh * ow), x_nchw.dtype),
        in_specs=[
            pl.BlockSpec(memory_space=pltpu.MemorySpace.VMEM),   # activations
            pl.BlockSpec(memory_space=pltpu.MemorySpace.SMEM),   # weight scalars
            pl.BlockSpec(memory_space=pltpu.MemorySpace.SMEM),   # bias scalars
        ],
        out_specs=pl.BlockSpec(memory_space=pltpu.MemorySpace.VMEM),
    )(x_flat, w_flat, b_flat)

    # Contiguous reshape (bitcast) to the NCHW valid-output shape.
    return out.reshape(n, cout, oh, ow)


if __name__ == "__main__":
    key = jax.random.PRNGKey(0)
    k_x, k_w, k_b = jax.random.split(key, 3)

    # Small shapes consistent with the module: batch=2, 3 channels, 16x16 spatial.
    N, CIN, H, W = 2, 3, 16, 16
    COUT, KH, KW = 3, 3, 3

    x = jax.random.normal(k_x, (N, CIN, H, W), dtype=jnp.float32)
    weight = jax.random.normal(k_w, (COUT, CIN, KH, KW), dtype=jnp.float32) * 0.1
    bias = jax.random.normal(k_b, (COUT,), dtype=jnp.float32) * 0.1

    out = jax.jit(conv2d_pallas)(x, weight, bias)
    out = jax.block_until_ready(out)

    # Cross-check against XLA's conv (same NCHW / OIHW semantics as PyTorch).
    ref = jax.lax.conv_general_dilated(
        x, weight, window_strides=(1, 1), padding="VALID",
        dimension_numbers=("NCHW", "OIHW", "NCHW"),
    ) + bias.reshape(1, COUT, 1, 1)
    assert out.shape == (N, COUT, H - KH + 1, W - KW + 1)
    assert jnp.allclose(out, ref, atol=1e-4, rtol=1e-4)

    print("KERNEL_OK")
</pallas_src>

<mosaic_0001>
module attributes {stable_mosaic.version = 11 : i64} {
  func.func @_conv_kernel(%arg0: memref<6x256xf32, #tpu.memory_space<vmem>>, %arg1: memref<81xf32, #tpu.memory_space<smem>>, %arg2: memref<3xf32, #tpu.memory_space<smem>>, %arg3: memref<2x3x196xf32, #tpu.memory_space<vmem>>) attributes {dimension_semantics = [], scalar_prefetch = 0 : i64, scratch_operands = 0 : i64, tpu.core_type = #tpu.core_type<tc>} {
    %c0 = arith.constant 0 : index
    %c0_0 = arith.constant 0 : index
    %0 = vector.load %arg0[%c0, %c0_0] : memref<6x256xf32, #tpu.memory_space<vmem>>, vector<6x256xf32>
    %1 = vector.extract_strided_slice %0 {offsets = [0, 0], sizes = [1, 256], strides = [1, 1]} : vector<6x256xf32> to vector<1x256xf32>
    %2 = vector.extract_strided_slice %0 {offsets = [3, 0], sizes = [1, 256], strides = [1, 1]} : vector<6x256xf32> to vector<1x256xf32>
    %3 = tpu.concatenate %1, %2 in 0 : vector<1x256xf32>, vector<1x256xf32> -> vector<2x256xf32>
    %4 = vector.extract_strided_slice %0 {offsets = [1, 0], sizes = [1, 256], strides = [1, 1]} : vector<6x256xf32> to vector<1x256xf32>
    %5 = vector.extract_strided_slice %0 {offsets = [4, 0], sizes = [1, 256], strides = [1, 1]} : vector<6x256xf32> to vector<1x256xf32>
    %6 = tpu.concatenate %4, %5 in 0 : vector<1x256xf32>, vector<1x256xf32> -> vector<2x256xf32>
    %7 = vector.extract_strided_slice %0 {offsets = [2, 0], sizes = [1, 256], strides = [1, 1]} : vector<6x256xf32> to vector<1x256xf32>
    %8 = vector.extract_strided_slice %0 {offsets = [5, 0], sizes = [1, 256], strides = [1, 1]} : vector<6x256xf32> to vector<1x256xf32>
    %9 = tpu.concatenate %7, %8 in 0 : vector<1x256xf32>, vector<1x256xf32> -> vector<2x256xf32>
    %10 = vector.extract_strided_slice %3 {offsets = [0, 0], sizes = [2, 222], strides = [1, 1]} : vector<2x256xf32> to vector<2x222xf32>
    %c0_1 = arith.constant 0 : index
    %11 = memref.load %arg1[%c0_1] : memref<81xf32, #tpu.memory_space<smem>>
    %12 = vector.broadcast %11 : f32 to vector<2x222xf32>
    %13 = arith.mulf %12, %10 : vector<2x222xf32>
    %c27 = arith.constant 27 : index
    %14 = memref.load %arg1[%c27] : memref<81xf32, #tpu.memory_space<smem>>
    %15 = vector.broadcast %14 : f32 to vector<2x222xf32>
    %16 = arith.mulf %15, %10 : vector<2x222xf32>
    %c54 = arith.constant 54 : index
    %17 = memref.load %arg1[%c54] : memref<81xf32, #tpu.memory_space<smem>>
    %18 = vector.broadcast %17 : f32 to vector<2x222xf32>
    %19 = arith.mulf %18, %10 : vector<2x222xf32>
    %20 = vector.extract_strided_slice %3 {offsets = [0, 1], sizes = [2, 222], strides = [1, 1]} : vector<2x256xf32> to vector<2x222xf32>
    %c1 = arith.constant 1 : index
    %21 = memref.load %arg1[%c1] : memref<81xf32, #tpu.memory_space<smem>>
    %22 = vector.broadcast %21 : f32 to vector<2x222xf32>
    %23 = arith.mulf %22, %20 : vector<2x222xf32>
    %24 = arith.addf %13, %23 : vector<2x222xf32>
    %c28 = arith.constant 28 : index
    %25 = memref.load %arg1[%c28] : memref<81xf32, #tpu.memory_space<smem>>
    %26 = vector.broadcast %25 : f32 to vector<2x222xf32>
    %27 = arith.mulf %26, %20 : vector<2x222xf32>
    %28 = arith.addf %16, %27 : vector<2x222xf32>
    %c55 = arith.constant 55 : index
    %29 = memref.load %arg1[%c55] : memref<81xf32, #tpu.memory_space<smem>>
    %30 = vector.broadcast %29 : f32 to vector<2x222xf32>
    %31 = arith.mulf %30, %20 : vector<2x222xf32>
    %32 = arith.addf %19, %31 : vector<2x222xf32>
    %33 = vector.extract_strided_slice %3 {offsets = [0, 2], sizes = [2, 222], strides = [1, 1]} : vector<2x256xf32> to vector<2x222xf32>
    %c2 = arith.constant 2 : index
    %34 = memref.load %arg1[%c2] : memref<81xf32, #tpu.memory_space<smem>>
    %35 = vector.broadcast %34 : f32 to vector<2x222xf32>
    %36 = arith.mulf %35, %33 : vector<2x222xf32>
    %37 = arith.addf %24, %36 : vector<2x222xf32>
    %c29 = arith.constant 29 : index
    %38 = memref.load %arg1[%c29] : memref<81xf32, #tpu.memory_space<smem>>
    %39 = vector.broadcast %38 : f32 to vector<2x222xf32>
    %40 = arith.mulf %39, %33 : vector<2x222xf32>
    %41 = arith.addf %28, %40 : vector<2x222xf32>
    %c56 = arith.constant 56 : index
    %42 = memref.load %arg1[%c56] : memref<81xf32, #tpu.memory_space<smem>>
    %43 = vector.broadcast %42 : f32 to vector<2x222xf32>
    %44 = arith.mulf %43, %33 : vector<2x222xf32>
    %45 = arith.addf %32, %44 : vector<2x222xf32>
    %46 = vector.extract_strided_slice %3 {offsets = [0, 16], sizes = [2, 222], strides = [1, 1]} : vector<2x256xf32> to vector<2x222xf32>
    %c3 = arith.constant 3 : index
    %47 = memref.load %arg1[%c3] : memref<81xf32, #tpu.memory_space<smem>>
    %48 = vector.broadcast %47 : f32 to vector<2x222xf32>
    %49 = arith.mulf %48, %46 : vector<2x222xf32>
    %50 = arith.addf %37, %49 : vector<2x222xf32>
    %c30 = arith.constant 30 : index
    %51 = memref.load %arg1[%c30] : memref<81xf32, #tpu.memory_space<smem>>
    %52 = vector.broadcast %51 : f32 to vector<2x222xf32>
    %53 = arith.mulf %52, %46 : vector<2x222xf32>
    %54 = arith.addf %41, %53 : vector<2x222xf32>
    %c57 = arith.constant 57 : index
    %55 = memref.load %arg1[%c57] : memref<81xf32, #tpu.memory_space<smem>>
    %56 = vector.broadcast %55 : f32 to vector<2x222xf32>
    %57 = arith.mulf %56, %46 : vector<2x222xf32>
    %58 = arith.addf %45, %57 : vector<2x222xf32>
    %59 = vector.extract_strided_slice %3 {offsets = [0, 17], sizes = [2, 222], strides = [1, 1]} : vector<2x256xf32> to vector<2x222xf32>
    %c4 = arith.constant 4 : index
    %60 = memref.load %arg1[%c4] : memref<81xf32, #tpu.memory_space<smem>>
    %61 = vector.broadcast %60 : f32 to vector<2x222xf32>
    %62 = arith.mulf %61, %59 : vector<2x222xf32>
    %63 = arith.addf %50, %62 : vector<2x222xf32>
    %c31 = arith.constant 31 : index
    %64 = memref.load %arg1[%c31] : memref<81xf32, #tpu.memory_space<smem>>
    %65 = vector.broadcast %64 : f32 to vector<2x222xf32>
    %66 = arith.mulf %65, %59 : vector<2x222xf32>
    %67 = arith.addf %54, %66 : vector<2x222xf32>
    %c58 = arith.constant 58 : index
    %68 = memref.load %arg1[%c58] : memref<81xf32, #tpu.memory_space<smem>>
    %69 = vector.broadcast %68 : f32 to vector<2x222xf32>
    %70 = arith.mulf %69, %59 : vector<2x222xf32>
    %71 = arith.addf %58, %70 : vector<2x222xf32>
    %72 = vector.extract_strided_slice %3 {offsets = [0, 18], sizes = [2, 222], strides = [1, 1]} : vector<2x256xf32> to vector<2x222xf32>
    %c5 = arith.constant 5 : index
    %73 = memref.load %arg1[%c5] : memref<81xf32, #tpu.memory_space<smem>>
    %74 = vector.broadcast %73 : f32 to vector<2x222xf32>
    %75 = arith.mulf %74, %72 : vector<2x222xf32>
    %76 = arith.addf %63, %75 : vector<2x222xf32>
    %c32 = arith.constant 32 : index
    %77 = memref.load %arg1[%c32] : memref<81xf32, #tpu.memory_space<smem>>
    %78 = vector.broadcast %77 : f32 to vector<2x222xf32>
    %79 = arith.mulf %78, %72 : vector<2x222xf32>
    %80 = arith.addf %67, %79 : vector<2x222xf32>
    %c59 = arith.constant 59 : index
    %81 = memref.load %arg1[%c59] : memref<81xf32, #tpu.memory_space<smem>>
    %82 = vector.broadcast %81 : f32 to vector<2x222xf32>
    %83 = arith.mulf %82, %72 : vector<2x222xf32>
    %84 = arith.addf %71, %83 : vector<2x222xf32>
    %85 = vector.extract_strided_slice %3 {offsets = [0, 32], sizes = [2, 222], strides = [1, 1]} : vector<2x256xf32> to vector<2x222xf32>
    %c6 = arith.constant 6 : index
    %86 = memref.load %arg1[%c6] : memref<81xf32, #tpu.memory_space<smem>>
    %87 = vector.broadcast %86 : f32 to vector<2x222xf32>
    %88 = arith.mulf %87, %85 : vector<2x222xf32>
    %89 = arith.addf %76, %88 : vector<2x222xf32>
    %c33 = arith.constant 33 : index
    %90 = memref.load %arg1[%c33] : memref<81xf32, #tpu.memory_space<smem>>
    %91 = vector.broadcast %90 : f32 to vector<2x222xf32>
    %92 = arith.mulf %91, %85 : vector<2x222xf32>
    %93 = arith.addf %80, %92 : vector<2x222xf32>
    %c60 = arith.constant 60 : index
    %94 = memref.load %arg1[%c60] : memref<81xf32, #tpu.memory_space<smem>>
    %95 = vector.broadcast %94 : f32 to vector<2x222xf32>
    %96 = arith.mulf %95, %85 : vector<2x222xf32>
    %97 = arith.addf %84, %96 : vector<2x222xf32>
    %98 = vector.extract_strided_slice %3 {offsets = [0, 33], sizes = [2, 222], strides = [1, 1]} : vector<2x256xf32> to vector<2x222xf32>
    %c7 = arith.constant 7 : index
    %99 = memref.load %arg1[%c7] : memref<81xf32, #tpu.memory_space<smem>>
    %100 = vector.broadcast %99 : f32 to vector<2x222xf32>
    %101 = arith.mulf %100, %98 : vector<2x222xf32>
    %102 = arith.addf %89, %101 : vector<2x222xf32>
    %c34 = arith.constant 34 : index
    %103 = memref.load %arg1[%c34] : memref<81xf32, #tpu.memory_space<smem>>
    %104 = vector.broadcast %103 : f32 to vector<2x222xf32>
    %105 = arith.mulf %104, %98 : vector<2x222xf32>
    %106 = arith.addf %93, %105 : vector<2x222xf32>
    %c61 = arith.constant 61 : index
    %107 = memref.load %arg1[%c61] : memref<81xf32, #tpu.memory_space<smem>>
    %108 = vector.broadcast %107 : f32 to vector<2x222xf32>
    %109 = arith.mulf %108, %98 : vector<2x222xf32>
    %110 = arith.addf %97, %109 : vector<2x222xf32>
    %111 = vector.extract_strided_slice %3 {offsets = [0, 34], sizes = [2, 222], strides = [1, 1]} : vector<2x256xf32> to vector<2x222xf32>
    %c8 = arith.constant 8 : index
    %112 = memref.load %arg1[%c8] : memref<81xf32, #tpu.memory_space<smem>>
    %113 = vector.broadcast %112 : f32 to vector<2x222xf32>
    %114 = arith.mulf %113, %111 : vector<2x222xf32>
    %115 = arith.addf %102, %114 : vector<2x222xf32>
    %c35 = arith.constant 35 : index
    %116 = memref.load %arg1[%c35] : memref<81xf32, #tpu.memory_space<smem>>
    %117 = vector.broadcast %116 : f32 to vector<2x222xf32>
    %118 = arith.mulf %117, %111 : vector<2x222xf32>
    %119 = arith.addf %106, %118 : vector<2x222xf32>
    %c62 = arith.constant 62 : index
    %120 = memref.load %arg1[%c62] : memref<81xf32, #tpu.memory_space<smem>>
    %121 = vector.broadcast %120 : f32 to vector<2x222xf32>
    %122 = arith.mulf %121, %111 : vector<2x222xf32>
    %123 = arith.addf %110, %122 : vector<2x222xf32>
    %124 = vector.extract_strided_slice %6 {offsets = [0, 0], sizes = [2, 222], strides = [1, 1]} : vector<2x256xf32> to vector<2x222xf32>
    %c9 = arith.constant 9 : index
    %125 = memref.load %arg1[%c9] : memref<81xf32, #tpu.memory_space<smem>>
    %126 = vector.broadcast %125 : f32 to vector<2x222xf32>
    %127 = arith.mulf %126, %124 : vector<2x222xf32>
    %c36 = arith.constant 36 : index
    %128 = memref.load %arg1[%c36] : memref<81xf32, #tpu.memory_space<smem>>
    %129 = vector.broadcast %128 : f32 to vector<2x222xf32>
    %130 = arith.mulf %129, %124 : vector<2x222xf32>
    %c63 = arith.constant 63 : index
    %131 = memref.load %arg1[%c63] : memref<81xf32, #tpu.memory_space<smem>>
    %132 = vector.broadcast %131 : f32 to vector<2x222xf32>
    %133 = arith.mulf %132, %124 : vector<2x222xf32>
    %134 = vector.extract_strided_slice %6 {offsets = [0, 1], sizes = [2, 222], strides = [1, 1]} : vector<2x256xf32> to vector<2x222xf32>
    %c10 = arith.constant 10 : index
    %135 = memref.load %arg1[%c10] : memref<81xf32, #tpu.memory_space<smem>>
    %136 = vector.broadcast %135 : f32 to vector<2x222xf32>
    %137 = arith.mulf %136, %134 : vector<2x222xf32>
    %138 = arith.addf %127, %137 : vector<2x222xf32>
    %c37 = arith.constant 37 : index
    %139 = memref.load %arg1[%c37] : memref<81xf32, #tpu.memory_space<smem>>
    %140 = vector.broadcast %139 : f32 to vector<2x222xf32>
    %141 = arith.mulf %140, %134 : vector<2x222xf32>
    %142 = arith.addf %130, %141 : vector<2x222xf32>
    %c64 = arith.constant 64 : index
    %143 = memref.load %arg1[%c64] : memref<81xf32, #tpu.memory_space<smem>>
    %144 = vector.broadcast %143 : f32 to vector<2x222xf32>
    %145 = arith.mulf %144, %134 : vector<2x222xf32>
    %146 = arith.addf %133, %145 : vector<2x222xf32>
    %147 = vector.extract_strided_slice %6 {offsets = [0, 2], sizes = [2, 222], strides = [1, 1]} : vector<2x256xf32> to vector<2x222xf32>
    %c11 = arith.constant 11 : index
    %148 = memref.load %arg1[%c11] : memref<81xf32, #tpu.memory_space<smem>>
    %149 = vector.broadcast %148 : f32 to vector<2x222xf32>
    %150 = arith.mulf %149, %147 : vector<2x222xf32>
    %151 = arith.addf %138, %150 : vector<2x222xf32>
    %c38 = arith.constant 38 : index
    %152 = memref.load %arg1[%c38] : memref<81xf32, #tpu.memory_space<smem>>
    %153 = vector.broadcast %152 : f32 to vector<2x222xf32>
    %154 = arith.mulf %153, %147 : vector<2x222xf32>
    %155 = arith.addf %142, %154 : vector<2x222xf32>
    %c65 = arith.constant 65 : index
    %156 = memref.load %arg1[%c65] : memref<81xf32, #tpu.memory_space<smem>>
    %157 = vector.broadcast %156 : f32 to vector<2x222xf32>
    %158 = arith.mulf %157, %147 : vector<2x222xf32>
    %159 = arith.addf %146, %158 : vector<2x222xf32>
    %160 = vector.extract_strided_slice %6 {offsets = [0, 16], sizes = [2, 222], strides = [1, 1]} : vector<2x256xf32> to vector<2x222xf32>
    %c12 = arith.constant 12 : index
    %161 = memref.load %arg1[%c12] : memref<81xf32, #tpu.memory_space<smem>>
    %162 = vector.broadcast %161 : f32 to vector<2x222xf32>
    %163 = arith.mulf %162, %160 : vector<2x222xf32>
    %164 = arith.addf %151, %163 : vector<2x222xf32>
    %c39 = arith.constant 39 : index
    %165 = memref.load %arg1[%c39] : memref<81xf32, #tpu.memory_space<smem>>
    %166 = vector.broadcast %165 : f32 to vector<2x222xf32>
    %167 = arith.mulf %166, %160 : vector<2x222xf32>
    %168 = arith.addf %155, %167 : vector<2x222xf32>
    %c66 = arith.constant 66 : index
    %169 = memref.load %arg1[%c66] : memref<81xf32, #tpu.memory_space<smem>>
    %170 = vector.broadcast %169 : f32 to vector<2x222xf32>
    %171 = arith.mulf %170, %160 : vector<2x222xf32>
    %172 = arith.addf %159, %171 : vector<2x222xf32>
    %173 = vector.extract_strided_slice %6 {offsets = [0, 17], sizes = [2, 222], strides = [1, 1]} : vector<2x256xf32> to vector<2x222xf32>
    %c13 = arith.constant 13 : index
    %174 = memref.load %arg1[%c13] : memref<81xf32, #tpu.memory_space<smem>>
    %175 = vector.broadcast %174 : f32 to vector<2x222xf32>
    %176 = arith.mulf %175, %173 : vector<2x222xf32>
    %177 = arith.addf %164, %176 : vector<2x222xf32>
    %c40 = arith.constant 40 : index
    %178 = memref.load %arg1[%c40] : memref<81xf32, #tpu.memory_space<smem>>
    %179 = vector.broadcast %178 : f32 to vector<2x222xf32>
    %180 = arith.mulf %179, %173 : vector<2x222xf32>
    %181 = arith.addf %168, %180 : vector<2x222xf32>
    %c67 = arith.constant 67 : index
    %182 = memref.load %arg1[%c67] : memref<81xf32, #tpu.memory_space<smem>>
    %183 = vector.broadcast %182 : f32 to vector<2x222xf32>
    %184 = arith.mulf %183, %173 : vector<2x222xf32>
    %185 = arith.addf %172, %184 : vector<2x222xf32>
    %186 = vector.extract_strided_slice %6 {offsets = [0, 18], sizes = [2, 222], strides = [1, 1]} : vector<2x256xf32> to vector<2x222xf32>
    %c14 = arith.constant 14 : index
    %187 = memref.load %arg1[%c14] : memref<81xf32, #tpu.memory_space<smem>>
    %188 = vector.broadcast %187 : f32 to vector<2x222xf32>
    %189 = arith.mulf %188, %186 : vector<2x222xf32>
    %190 = arith.addf %177, %189 : vector<2x222xf32>
    %c41 = arith.constant 41 : index
    %191 = memref.load %arg1[%c41] : memref<81xf32, #tpu.memory_space<smem>>
    %192 = vector.broadcast %191 : f32 to vector<2x222xf32>
    %193 = arith.mulf %192, %186 : vector<2x222xf32>
    %194 = arith.addf %181, %193 : vector<2x222xf32>
    %c68 = arith.constant 68 : index
    %195 = memref.load %arg1[%c68] : memref<81xf32, #tpu.memory_space<smem>>
    %196 = vector.broadcast %195 : f32 to vector<2x222xf32>
    %197 = arith.mulf %196, %186 : vector<2x222xf32>
    %198 = arith.addf %185, %197 : vector<2x222xf32>
    %199 = vector.extract_strided_slice %6 {offsets = [0, 32], sizes = [2, 222], strides = [1, 1]} : vector<2x256xf32> to vector<2x222xf32>
    %c15 = arith.constant 15 : index
    %200 = memref.load %arg1[%c15] : memref<81xf32, #tpu.memory_space<smem>>
    %201 = vector.broadcast %200 : f32 to vector<2x222xf32>
    %202 = arith.mulf %201, %199 : vector<2x222xf32>
    %203 = arith.addf %190, %202 : vector<2x222xf32>
    %c42 = arith.constant 42 : index
    %204 = memref.load %arg1[%c42] : memref<81xf32, #tpu.memory_space<smem>>
    %205 = vector.broadcast %204 : f32 to vector<2x222xf32>
    %206 = arith.mulf %205, %199 : vector<2x222xf32>
    %207 = arith.addf %194, %206 : vector<2x222xf32>
    %c69 = arith.constant 69 : index
    %208 = memref.load %arg1[%c69] : memref<81xf32, #tpu.memory_space<smem>>
    %209 = vector.broadcast %208 : f32 to vector<2x222xf32>
    %210 = arith.mulf %209, %199 : vector<2x222xf32>
    %211 = arith.addf %198, %210 : vector<2x222xf32>
    %212 = vector.extract_strided_slice %6 {offsets = [0, 33], sizes = [2, 222], strides = [1, 1]} : vector<2x256xf32> to vector<2x222xf32>
    %c16 = arith.constant 16 : index
    %213 = memref.load %arg1[%c16] : memref<81xf32, #tpu.memory_space<smem>>
    %214 = vector.broadcast %213 : f32 to vector<2x222xf32>
    %215 = arith.mulf %214, %212 : vector<2x222xf32>
    %216 = arith.addf %203, %215 : vector<2x222xf32>
    %c43 = arith.constant 43 : index
    %217 = memref.load %arg1[%c43] : memref<81xf32, #tpu.memory_space<smem>>
    %218 = vector.broadcast %217 : f32 to vector<2x222xf32>
    %219 = arith.mulf %218, %212 : vector<2x222xf32>
    %220 = arith.addf %207, %219 : vector<2x222xf32>
    %c70 = arith.constant 70 : index
    %221 = memref.load %arg1[%c70] : memref<81xf32, #tpu.memory_space<smem>>
    %222 = vector.broadcast %221 : f32 to vector<2x222xf32>
    %223 = arith.mulf %222, %212 : vector<2x222xf32>
    %224 = arith.addf %211, %223 : vector<2x222xf32>
    %225 = vector.extract_strided_slice %6 {offsets = [0, 34], sizes = [2, 222], strides = [1, 1]} : vector<2x256xf32> to vector<2x222xf32>
    %c17 = arith.constant 17 : index
    %226 = memref.load %arg1[%c17] : memref<81xf32, #tpu.memory_space<smem>>
    %227 = vector.broadcast %226 : f32 to vector<2x222xf32>
    %228 = arith.mulf %227, %225 : vector<2x222xf32>
    %229 = arith.addf %216, %228 : vector<2x222xf32>
    %c44 = arith.constant 44 : index
    %230 = memref.load %arg1[%c44] : memref<81xf32, #tpu.memory_space<smem>>
    %231 = vector.broadcast %230 : f32 to vector<2x222xf32>
    %232 = arith.mulf %231, %225 : vector<2x222xf32>
    %233 = arith.addf %220, %232 : vector<2x222xf32>
    %c71 = arith.constant 71 : index
    %234 = memref.load %arg1[%c71] : memref<81xf32, #tpu.memory_space<smem>>
    %235 = vector.broadcast %234 : f32 to vector<2x222xf32>
    %236 = arith.mulf %235, %225 : vector<2x222xf32>
    %237 = arith.addf %224, %236 : vector<2x222xf32>
    %238 = vector.extract_strided_slice %9 {offsets = [0, 0], sizes = [2, 222], strides = [1, 1]} : vector<2x256xf32> to vector<2x222xf32>
    %c18 = arith.constant 18 : index
    %239 = memref.load %arg1[%c18] : memref<81xf32, #tpu.memory_space<smem>>
    %240 = vector.broadcast %239 : f32 to vector<2x222xf32>
    %241 = arith.mulf %240, %238 : vector<2x222xf32>
    %c45 = arith.constant 45 : index
    %242 = memref.load %arg1[%c45] : memref<81xf32, #tpu.memory_space<smem>>
    %243 = vector.broadcast %242 : f32 to vector<2x222xf32>
    %244 = arith.mulf %243, %238 : vector<2x222xf32>
    %c72 = arith.constant 72 : index
    %245 = memref.load %arg1[%c72] : memref<81xf32, #tpu.memory_space<smem>>
    %246 = vector.broadcast %245 : f32 to vector<2x222xf32>
    %247 = arith.mulf %246, %238 : vector<2x222xf32>
    %248 = vector.extract_strided_slice %9 {offsets = [0, 1], sizes = [2, 222], strides = [1, 1]} : vector<2x256xf32> to vector<2x222xf32>
    %c19 = arith.constant 19 : index
    %249 = memref.load %arg1[%c19] : memref<81xf32, #tpu.memory_space<smem>>
    %250 = vector.broadcast %249 : f32 to vector<2x222xf32>
    %251 = arith.mulf %250, %248 : vector<2x222xf32>
    %252 = arith.addf %241, %251 : vector<2x222xf32>
    %c46 = arith.constant 46 : index
    %253 = memref.load %arg1[%c46] : memref<81xf32, #tpu.memory_space<smem>>
    %254 = vector.broadcast %253 : f32 to vector<2x222xf32>
    %255 = arith.mulf %254, %248 : vector<2x222xf32>
    %256 = arith.addf %244, %255 : vector<2x222xf32>
    %c73 = arith.constant 73 : index
    %257 = memref.load %arg1[%c73] : memref<81xf32, #tpu.memory_space<smem>>
    %258 = vector.broadcast %257 : f32 to vector<2x222xf32>
    %259 = arith.mulf %258, %248 : vector<2x222xf32>
    %260 = arith.addf %247, %259 : vector<2x222xf32>
    %261 = vector.extract_strided_slice %9 {offsets = [0, 2], sizes = [2, 222], strides = [1, 1]} : vector<2x256xf32> to vector<2x222xf32>
    %c20 = arith.constant 20 : index
    %262 = memref.load %arg1[%c20] : memref<81xf32, #tpu.memory_space<smem>>
    %263 = vector.broadcast %262 : f32 to vector<2x222xf32>
    %264 = arith.mulf %263, %261 : vector<2x222xf32>
    %265 = arith.addf %252, %264 : vector<2x222xf32>
    %c47 = arith.constant 47 : index
    %266 = memref.load %arg1[%c47] : memref<81xf32, #tpu.memory_space<smem>>
    %267 = vector.broadcast %266 : f32 to vector<2x222xf32>
    %268 = arith.mulf %267, %261 : vector<2x222xf32>
    %269 = arith.addf %256, %268 : vector<2x222xf32>
    %c74 = arith.constant 74 : index
    %270 = memref.load %arg1[%c74] : memref<81xf32, #tpu.memory_space<smem>>
    %271 = vector.broadcast %270 : f32 to vector<2x222xf32>
    %272 = arith.mulf %271, %261 : vector<2x222xf32>
    %273 = arith.addf %260, %272 : vector<2x222xf32>
    %274 = vector.extract_strided_slice %9 {offsets = [0, 16], sizes = [2, 222], strides = [1, 1]} : vector<2x256xf32> to vector<2x222xf32>
    %c21 = arith.constant 21 : index
    %275 = memref.load %arg1[%c21] : memref<81xf32, #tpu.memory_space<smem>>
    %276 = vector.broadcast %275 : f32 to vector<2x222xf32>
    %277 = arith.mulf %276, %274 : vector<2x222xf32>
    %278 = arith.addf %265, %277 : vector<2x222xf32>
    %c48 = arith.constant 48 : index
    %279 = memref.load %arg1[%c48] : memref<81xf32, #tpu.memory_space<smem>>
    %280 = vector.broadcast %279 : f32 to vector<2x222xf32>
    %281 = arith.mulf %280, %274 : vector<2x222xf32>
    %282 = arith.addf %269, %281 : vector<2x222xf32>
    %c75 = arith.constant 75 : index
    %283 = memref.load %arg1[%c75] : memref<81xf32, #tpu.memory_space<smem>>
    %284 = vector.broadcast %283 : f32 to vector<2x222xf32>
    %285 = arith.mulf %284, %274 : vector<2x222xf32>
    %286 = arith.addf %273, %285 : vector<2x222xf32>
    %287 = vector.extract_strided_slice %9 {offsets = [0, 17], sizes = [2, 222], strides = [1, 1]} : vector<2x256xf32> to vector<2x222xf32>
    %c22 = arith.constant 22 : index
    %288 = memref.load %arg1[%c22] : memref<81xf32, #tpu.memory_space<smem>>
    %289 = vector.broadcast %288 : f32 to vector<2x222xf32>
    %290 = arith.mulf %289, %287 : vector<2x222xf32>
    %291 = arith.addf %278, %290 : vector<2x222xf32>
    %c49 = arith.constant 49 : index
    %292 = memref.load %arg1[%c49] : memref<81xf32, #tpu.memory_space<smem>>
    %293 = vector.broadcast %292 : f32 to vector<2x222xf32>
    %294 = arith.mulf %293, %287 : vector<2x222xf32>
    %295 = arith.addf %282, %294 : vector<2x222xf32>
    %c76 = arith.constant 76 : index
    %296 = memref.load %arg1[%c76] : memref<81xf32, #tpu.memory_space<smem>>
    %297 = vector.broadcast %296 : f32 to vector<2x222xf32>
    %298 = arith.mulf %297, %287 : vector<2x222xf32>
    %299 = arith.addf %286, %298 : vector<2x222xf32>
    %300 = vector.extract_strided_slice %9 {offsets = [0, 18], sizes = [2, 222], strides = [1, 1]} : vector<2x256xf32> to vector<2x222xf32>
    %c23 = arith.constant 23 : index
    %301 = memref.load %arg1[%c23] : memref<81xf32, #tpu.memory_space<smem>>
    %302 = vector.broadcast %301 : f32 to vector<2x222xf32>
    %303 = arith.mulf %302, %300 : vector<2x222xf32>
    %304 = arith.addf %291, %303 : vector<2x222xf32>
    %c50 = arith.constant 50 : index
    %305 = memref.load %arg1[%c50] : memref<81xf32, #tpu.memory_space<smem>>
    %306 = vector.broadcast %305 : f32 to vector<2x222xf32>
    %307 = arith.mulf %306, %300 : vector<2x222xf32>
    %308 = arith.addf %295, %307 : vector<2x222xf32>
    %c77 = arith.constant 77 : index
    %309 = memref.load %arg1[%c77] : memref<81xf32, #tpu.memory_space<smem>>
    %310 = vector.broadcast %309 : f32 to vector<2x222xf32>
    %311 = arith.mulf %310, %300 : vector<2x222xf32>
    %312 = arith.addf %299, %311 : vector<2x222xf32>
    %313 = vector.extract_strided_slice %9 {offsets = [0, 32], sizes = [2, 222], strides = [1, 1]} : vector<2x256xf32> to vector<2x222xf32>
    %c24 = arith.constant 24 : index
    %314 = memref.load %arg1[%c24] : memref<81xf32, #tpu.memory_space<smem>>
    %315 = vector.broadcast %314 : f32 to vector<2x222xf32>
    %316 = arith.mulf %315, %313 : vector<2x222xf32>
    %317 = arith.addf %304, %316 : vector<2x222xf32>
    %c51 = arith.constant 51 : index
    %318 = memref.load %arg1[%c51] : memref<81xf32, #tpu.memory_space<smem>>
    %319 = vector.broadcast %318 : f32 to vector<2x222xf32>
    %320 = arith.mulf %319, %313 : vector<2x222xf32>
    %321 = arith.addf %308, %320 : vector<2x222xf32>
    %c78 = arith.constant 78 : index
    %322 = memref.load %arg1[%c78] : memref<81xf32, #tpu.memory_space<smem>>
    %323 = vector.broadcast %322 : f32 to vector<2x222xf32>
    %324 = arith.mulf %323, %313 : vector<2x222xf32>
    %325 = arith.addf %312, %324 : vector<2x222xf32>
    %326 = vector.extract_strided_slice %9 {offsets = [0, 33], sizes = [2, 222], strides = [1, 1]} : vector<2x256xf32> to vector<2x222xf32>
    %c25 = arith.constant 25 : index
    %327 = memref.load %arg1[%c25] : memref<81xf32, #tpu.memory_space<smem>>
    %328 = vector.broadcast %327 : f32 to vector<2x222xf32>
    %329 = arith.mulf %328, %326 : vector<2x222xf32>
    %330 = arith.addf %317, %329 : vector<2x222xf32>
    %c52 = arith.constant 52 : index
    %331 = memref.load %arg1[%c52] : memref<81xf32, #tpu.memory_space<smem>>
    %332 = vector.broadcast %331 : f32 to vector<2x222xf32>
    %333 = arith.mulf %332, %326 : vector<2x222xf32>
    %334 = arith.addf %321, %333 : vector<2x222xf32>
    %c79 = arith.constant 79 : index
    %335 = memref.load %arg1[%c79] : memref<81xf32, #tpu.memory_space<smem>>
    %336 = vector.broadcast %335 : f32 to vector<2x222xf32>
    %337 = arith.mulf %336, %326 : vector<2x222xf32>
    %338 = arith.addf %325, %337 : vector<2x222xf32>
    %339 = vector.extract_strided_slice %9 {offsets = [0, 34], sizes = [2, 222], strides = [1, 1]} : vector<2x256xf32> to vector<2x222xf32>
    %c26 = arith.constant 26 : index
    %340 = memref.load %arg1[%c26] : memref<81xf32, #tpu.memory_space<smem>>
    %341 = vector.broadcast %340 : f32 to vector<2x222xf32>
    %342 = arith.mulf %341, %339 : vector<2x222xf32>
    %343 = arith.addf %330, %342 : vector<2x222xf32>
    %c53 = arith.constant 53 : index
    %344 = memref.load %arg1[%c53] : memref<81xf32, #tpu.memory_space<smem>>
    %345 = vector.broadcast %344 : f32 to vector<2x222xf32>
    %346 = arith.mulf %345, %339 : vector<2x222xf32>
    %347 = arith.addf %334, %346 : vector<2x222xf32>
    %c80 = arith.constant 80 : index
    %348 = memref.load %arg1[%c80] : memref<81xf32, #tpu.memory_space<smem>>
    %349 = vector.broadcast %348 : f32 to vector<2x222xf32>
    %350 = arith.mulf %349, %339 : vector<2x222xf32>
    %351 = arith.addf %338, %350 : vector<2x222xf32>
    %352 = arith.addf %115, %229 : vector<2x222xf32>
    %353 = arith.addf %352, %343 : vector<2x222xf32>
    %c0_2 = arith.constant 0 : index
    %354 = memref.load %arg2[%c0_2] : memref<3xf32, #tpu.memory_space<smem>>
    %355 = vector.broadcast %354 : f32 to vector<2x222xf32>
    %356 = arith.addf %353, %355 : vector<2x222xf32>
    %357 = vector.extract_strided_slice %356 {offsets = [0, 0], sizes = [2, 14], strides = [1, 1]} : vector<2x222xf32> to vector<2x14xf32>
    %c0_3 = arith.constant 0 : index
    %c0_4 = arith.constant 0 : index
    %c0_5 = arith.constant 0 : index
    %358 = vector.load %arg3[%c0_3, %c0_4, %c0_5] : memref<2x3x196xf32, #tpu.memory_space<vmem>>, vector<2x1x14xf32>
    %359 = vector.shape_cast %358 : vector<2x1x14xf32> to vector<2x14xf32>
    %360 = vector.shape_cast %357 : vector<2x14xf32> to vector<2x1x14xf32>
    tpu.vector_store %arg3[%c0_3, %c0_4, %c0_5], %360 {strides = array<i32>} : memref<2x3x196xf32, #tpu.memory_space<vmem>>, vector<2x1x14xf32>,
    %361 = vector.extract_strided_slice %356 {offsets = [0, 16], sizes = [2, 14], strides = [1, 1]} : vector<2x222xf32> to vector<2x14xf32>
    %c0_6 = arith.constant 0 : index
    %c0_7 = arith.constant 0 : index
    %c14_8 = arith.constant 14 : index
    %362 = vector.load %arg3[%c0_6, %c0_7, %c14_8] : memref<2x3x196xf32, #tpu.memory_space<vmem>>, vector<2x1x14xf32>
    %363 = vector.shape_cast %362 : vector<2x1x14xf32> to vector<2x14xf32>
    %364 = vector.shape_cast %361 : vector<2x14xf32> to vector<2x1x14xf32>
    tpu.vector_store %arg3[%c0_6, %c0_7, %c14_8], %364 {strides = array<i32>} : memref<2x3x196xf32, #tpu.memory_space<vmem>>, vector<2x1x14xf32>,
    %365 = vector.extract_strided_slice %356 {offsets = [0, 32], sizes = [2, 14], strides = [1, 1]} : vector<2x222xf32> to vector<2x14xf32>
    %c0_9 = arith.constant 0 : index
    %c0_10 = arith.constant 0 : index
    %c28_11 = arith.constant 28 : index
    %366 = vector.load %arg3[%c0_9, %c0_10, %c28_11] : memref<2x3x196xf32, #tpu.memory_space<vmem>>, vector<2x1x14xf32>
    %367 = vector.shape_cast %366 : vector<2x1x14xf32> to vector<2x14xf32>
    %368 = vector.shape_cast %365 : vector<2x14xf32> to vector<2x1x14xf32>
    tpu.vector_store %arg3[%c0_9, %c0_10, %c28_11], %368 {strides = array<i32>} : memref<2x3x196xf32, #tpu.memory_space<vmem>>, vector<2x1x14xf32>,
    %369 = vector.extract_strided_slice %356 {offsets = [0, 48], sizes = [2, 14], strides = [1, 1]} : vector<2x222xf32> to vector<2x14xf32>
    %c0_12 = arith.constant 0 : index
    %c0_13 = arith.constant 0 : index
    %c42_14 = arith.constant 42 : index
    %370 = vector.load %arg3[%c0_12, %c0_13, %c42_14] : memref<2x3x196xf32, #tpu.memory_space<vmem>>, vector<2x1x14xf32>
    %371 = vector.shape_cast %370 : vector<2x1x14xf32> to vector<2x14xf32>
    %372 = vector.shape_cast %369 : vector<2x14xf32> to vector<2x1x14xf32>
    tpu.vector_store %arg3[%c0_12, %c0_13, %c42_14], %372 {strides = array<i32>} : memref<2x3x196xf32, #tpu.memory_space<vmem>>, vector<2x1x14xf32>,
    %373 = vector.extract_strided_slice %356 {offsets = [0, 64], sizes = [2, 14], strides = [1, 1]} : vector<2x222xf32> to vector<2x14xf32>
    %c0_15 = arith.constant 0 : index
    %c0_16 = arith.constant 0 : index
    %c56_17 = arith.constant 56 : index
    %374 = vector.load %arg3[%c0_15, %c0_16, %c56_17] : memref<2x3x196xf32, #tpu.memory_space<vmem>>, vector<2x1x14xf32>
    %375 = vector.shape_cast %374 : vector<2x1x14xf32> to vector<2x14xf32>
    %376 = vector.shape_cast %373 : vector<2x14xf32> to vector<2x1x14xf32>
    tpu.vector_store %arg3[%c0_15, %c0_16, %c56_17], %376 {strides = array<i32>} : memref<2x3x196xf32, #tpu.memory_space<vmem>>, vector<2x1x14xf32>,
    %377 = vector.extract_strided_slice %356 {offsets = [0, 80], sizes = [2, 14], strides = [1, 1]} : vector<2x222xf32> to vector<2x14xf32>
    %c0_18 = arith.constant 0 : index
    %c0_19 = arith.constant 0 : index
    %c70_20 = arith.constant 70 : index
    %378 = vector.load %arg3[%c0_18, %c0_19, %c70_20] : memref<2x3x196xf32, #tpu.memory_space<vmem>>, vector<2x1x14xf32>
    %379 = vector.shape_cast %378 : vector<2x1x14xf32> to vector<2x14xf32>
    %380 = vector.shape_cast %377 : vector<2x14xf32> to vector<2x1x14xf32>
    tpu.vector_store %arg3[%c0_18, %c0_19, %c70_20], %380 {strides = array<i32>} : memref<2x3x196xf32, #tpu.memory_space<vmem>>, vector<2x1x14xf32>,
    %381 = vector.extract_strided_slice %356 {offsets = [0, 96], sizes = [2, 14], strides = [1, 1]} : vector<2x222xf32> to vector<2x14xf32>
    %c0_21 = arith.constant 0 : index
    %c0_22 = arith.constant 0 : index
    %c84 = arith.constant 84 : index
    %382 = vector.load %arg3[%c0_21, %c0_22, %c84] : memref<2x3x196xf32, #tpu.memory_space<vmem>>, vector<2x1x14xf32>
    %383 = vector.shape_cast %382 : vector<2x1x14xf32> to vector<2x14xf32>
    %384 = vector.shape_cast %381 : vector<2x14xf32> to vector<2x1x14xf32>
    tpu.vector_store %arg3[%c0_21, %c0_22, %c84], %384 {strides = array<i32>} : memref<2x3x196xf32, #tpu.memory_space<vmem>>, vector<2x1x14xf32>,
    %385 = vector.extract_strided_slice %356 {offsets = [0, 112], sizes = [2, 14], strides = [1, 1]} : vector<2x222xf32> to vector<2x14xf32>
    %c0_23 = arith.constant 0 : index
    %c0_24 = arith.constant 0 : index
    %c98 = arith.constant 98 : index
    %386 = vector.load %arg3[%c0_23, %c0_24, %c98] : memref<2x3x196xf32, #tpu.memory_space<vmem>>, vector<2x1x14xf32>
    %387 = vector.shape_cast %386 : vector<2x1x14xf32> to vector<2x14xf32>
    %388 = vector.shape_cast %385 : vector<2x14xf32> to vector<2x1x14xf32>
    tpu.vector_store %arg3[%c0_23, %c0_24, %c98], %388 {strides = array<i32>} : memref<2x3x196xf32, #tpu.memory_space<vmem>>, vector<2x1x14xf32>,
    %389 = vector.extract_strided_slice %356 {offsets = [0, 128], sizes = [2, 14], strides = [1, 1]} : vector<2x222xf32> to vector<2x14xf32>
    %c0_25 = arith.constant 0 : index
    %c0_26 = arith.constant 0 : index
    %c112 = arith.constant 112 : index
    %390 = vector.load %arg3[%c0_25, %c0_26, %c112] : memref<2x3x196xf32, #tpu.memory_space<vmem>>, vector<2x1x14xf32>
    %391 = vector.shape_cast %390 : vector<2x1x14xf32> to vector<2x14xf32>
    %392 = vector.shape_cast %389 : vector<2x14xf32> to vector<2x1x14xf32>
    tpu.vector_store %arg3[%c0_25, %c0_26, %c112], %392 {strides = array<i32>} : memref<2x3x196xf32, #tpu.memory_space<vmem>>, vector<2x1x14xf32>,
    %393 = vector.extract_strided_slice %356 {offsets = [0, 144], sizes = [2, 14], strides = [1, 1]} : vector<2x222xf32> to vector<2x14xf32>
    %c0_27 = arith.constant 0 : index
    %c0_28 = arith.constant 0 : index
    %c126 = arith.constant 126 : index
    %394 = vector.load %arg3[%c0_27, %c0_28, %c126] : memref<2x3x196xf32, #tpu.memory_space<vmem>>, vector<2x1x14xf32>
    %395 = vector.shape_cast %394 : vector<2x1x14xf32> to vector<2x14xf32>
    %396 = vector.shape_cast %393 : vector<2x14xf32> to vector<2x1x14xf32>
    tpu.vector_store %arg3[%c0_27, %c0_28, %c126], %396 {strides = array<i32>} : memref<2x3x196xf32, #tpu.memory_space<vmem>>, vector<2x1x14xf32>,
    %397 = vector.extract_strided_slice %356 {offsets = [0, 160], sizes = [2, 14], strides = [1, 1]} : vector<2x222xf32> to vector<2x14xf32>
    %c0_29 = arith.constant 0 : index
    %c0_30 = arith.constant 0 : index
    %c140 = arith.constant 140 : index
    %398 = vector.load %arg3[%c0_29, %c0_30, %c140] : memref<2x3x196xf32, #tpu.memory_space<vmem>>, vector<2x1x14xf32>
    %399 = vector.shape_cast %398 : vector<2x1x14xf32> to vector<2x14xf32>
    %400 = vector.shape_cast %397 : vector<2x14xf32> to vector<2x1x14xf32>
    tpu.vector_store %arg3[%c0_29, %c0_30, %c140], %400 {strides = array<i32>} : memref<2x3x196xf32, #tpu.memory_space<vmem>>, vector<2x1x14xf32>,
    %401 = vector.extract_strided_slice %356 {offsets = [0, 176], sizes = [2, 14], strides = [1, 1]} : vector<2x222xf32> to vector<2x14xf32>
    %c0_31 = arith.constant 0 : index
    %c0_32 = arith.constant 0 : index
    %c154 = arith.constant 154 : index
    %402 = vector.load %arg3[%c0_31, %c0_32, %c154] : memref<2x3x196xf32, #tpu.memory_space<vmem>>, vector<2x1x14xf32>
    %403 = vector.shape_cast %402 : vector<2x1x14xf32> to vector<2x14xf32>
    %404 = vector.shape_cast %401 : vector<2x14xf32> to vector<2x1x14xf32>
    tpu.vector_store %arg3[%c0_31, %c0_32, %c154], %404 {strides = array<i32>} : memref<2x3x196xf32, #tpu.memory_space<vmem>>, vector<2x1x14xf32>,
    %405 = vector.extract_strided_slice %356 {offsets = [0, 192], sizes = [2, 14], strides = [1, 1]} : vector<2x222xf32> to vector<2x14xf32>
    %c0_33 = arith.constant 0 : index
    %c0_34 = arith.constant 0 : index
    %c168 = arith.constant 168 : index
    %406 = vector.load %arg3[%c0_33, %c0_34, %c168] : memref<2x3x196xf32, #tpu.memory_space<vmem>>, vector<2x1x14xf32>
    %407 = vector.shape_cast %406 : vector<2x1x14xf32> to vector<2x14xf32>
    %408 = vector.shape_cast %405 : vector<2x14xf32> to vector<2x1x14xf32>
    tpu.vector_store %arg3[%c0_33, %c0_34, %c168], %408 {strides = array<i32>} : memref<2x3x196xf32, #tpu.memory_space<vmem>>, vector<2x1x14xf32>,
    %409 = vector.extract_strided_slice %356 {offsets = [0, 208], sizes = [2, 14], strides = [1, 1]} : vector<2x222xf32> to vector<2x14xf32>
    %c0_35 = arith.constant 0 : index
    %c0_36 = arith.constant 0 : index
    %c182 = arith.constant 182 : index
    %410 = vector.load %arg3[%c0_35, %c0_36, %c182] : memref<2x3x196xf32, #tpu.memory_space<vmem>>, vector<2x1x14xf32>
    %411 = vector.shape_cast %410 : vector<2x1x14xf32> to vector<2x14xf32>
    %412 = vector.shape_cast %409 : vector<2x14xf32> to vector<2x1x14xf32>
    tpu.vector_store %arg3[%c0_35, %c0_36, %c182], %412 {strides = array<i32>} : memref<2x3x196xf32, #tpu.memory_space<vmem>>, vector<2x1x14xf32>,
    %413 = arith.addf %119, %233 : vector<2x222xf32>
    %414 = arith.addf %413, %347 : vector<2x222xf32>
    %c1_37 = arith.constant 1 : index
    %415 = memref.load %arg2[%c1_37] : memref<3xf32, #tpu.memory_space<smem>>
    %416 = vector.broadcast %415 : f32 to vector<2x222xf32>
    %417 = arith.addf %414, %416 : vector<2x222xf32>
    %418 = vector.extract_strided_slice %417 {offsets = [0, 0], sizes = [2, 14], strides = [1, 1]} : vector<2x222xf32> to vector<2x14xf32>
    %c0_38 = arith.constant 0 : index
    %c1_39 = arith.constant 1 : index
    %c0_40 = arith.constant 0 : index
    %419 = vector.load %arg3[%c0_38, %c1_39, %c0_40] : memref<2x3x196xf32, #tpu.memory_space<vmem>>, vector<2x1x14xf32>
    %420 = vector.shape_cast %419 : vector<2x1x14xf32> to vector<2x14xf32>
    %421 = vector.shape_cast %418 : vector<2x14xf32> to vector<2x1x14xf32>
    tpu.vector_store %arg3[%c0_38, %c1_39, %c0_40], %421 {strides = array<i32>} : memref<2x3x196xf32, #tpu.memory_space<vmem>>, vector<2x1x14xf32>,
    %422 = vector.extract_strided_slice %417 {offsets = [0, 16], sizes = [2, 14], strides = [1, 1]} : vector<2x222xf32> to vector<2x14xf32>
    %c0_41 = arith.constant 0 : index
    %c1_42 = arith.constant 1 : index
    %c14_43 = arith.constant 14 : index
    %423 = vector.load %arg3[%c0_41, %c1_42, %c14_43] : memref<2x3x196xf32, #tpu.memory_space<vmem>>, vector<2x1x14xf32>
    %424 = vector.shape_cast %423 : vector<2x1x14xf32> to vector<2x14xf32>
    %425 = vector.shape_cast %422 : vector<2x14xf32> to vector<2x1x14xf32>
    tpu.vector_store %arg3[%c0_41, %c1_42, %c14_43], %425 {strides = array<i32>} : memref<2x3x196xf32, #tpu.memory_space<vmem>>, vector<2x1x14xf32>,
    %426 = vector.extract_strided_slice %417 {offsets = [0, 32], sizes = [2, 14], strides = [1, 1]} : vector<2x222xf32> to vector<2x14xf32>
    %c0_44 = arith.constant 0 : index
    %c1_45 = arith.constant 1 : index
    %c28_46 = arith.constant 28 : index
    %427 = vector.load %arg3[%c0_44, %c1_45, %c28_46] : memref<2x3x196xf32, #tpu.memory_space<vmem>>, vector<2x1x14xf32>
    %428 = vector.shape_cast %427 : vector<2x1x14xf32> to vector<2x14xf32>
    %429 = vector.shape_cast %426 : vector<2x14xf32> to vector<2x1x14xf32>
    tpu.vector_store %arg3[%c0_44, %c1_45, %c28_46], %429 {strides = array<i32>} : memref<2x3x196xf32, #tpu.memory_space<vmem>>, vector<2x1x14xf32>,
    %430 = vector.extract_strided_slice %417 {offsets = [0, 48], sizes = [2, 14], strides = [1, 1]} : vector<2x222xf32> to vector<2x14xf32>
    %c0_47 = arith.constant 0 : index
    %c1_48 = arith.constant 1 : index
    %c42_49 = arith.constant 42 : index
    %431 = vector.load %arg3[%c0_47, %c1_48, %c42_49] : memref<2x3x196xf32, #tpu.memory_space<vmem>>, vector<2x1x14xf32>
    %432 = vector.shape_cast %431 : vector<2x1x14xf32> to vector<2x14xf32>
    %433 = vector.shape_cast %430 : vector<2x14xf32> to vector<2x1x14xf32>
    tpu.vector_store %arg3[%c0_47, %c1_48, %c42_49], %433 {strides = array<i32>} : memref<2x3x196xf32, #tpu.memory_space<vmem>>, vector<2x1x14xf32>,
    %434 = vector.extract_strided_slice %417 {offsets = [0, 64], sizes = [2, 14], strides = [1, 1]} : vector<2x222xf32> to vector<2x14xf32>
    %c0_50 = arith.constant 0 : index
    %c1_51 = arith.constant 1 : index
    %c56_52 = arith.constant 56 : index
    %435 = vector.load %arg3[%c0_50, %c1_51, %c56_52] : memref<2x3x196xf32, #tpu.memory_space<vmem>>, vector<2x1x14xf32>
    %436 = vector.shape_cast %435 : vector<2x1x14xf32> to vector<2x14xf32>
    %437 = vector.shape_cast %434 : vector<2x14xf32> to vector<2x1x14xf32>
    tpu.vector_store %arg3[%c0_50, %c1_51, %c56_52], %437 {strides = array<i32>} : memref<2x3x196xf32, #tpu.memory_space<vmem>>, vector<2x1x14xf32>,
    %438 = vector.extract_strided_slice %417 {offsets = [0, 80], sizes = [2, 14], strides = [1, 1]} : vector<2x222xf32> to vector<2x14xf32>
    %c0_53 = arith.constant 0 : index
    %c1_54 = arith.constant 1 : index
    %c70_55 = arith.constant 70 : index
    %439 = vector.load %arg3[%c0_53, %c1_54, %c70_55] : memref<2x3x196xf32, #tpu.memory_space<vmem>>, vector<2x1x14xf32>
    %440 = vector.shape_cast %439 : vector<2x1x14xf32> to vector<2x14xf32>
    %441 = vector.shape_cast %438 : vector<2x14xf32> to vector<2x1x14xf32>
    tpu.vector_store %arg3[%c0_53, %c1_54, %c70_55], %441 {strides = array<i32>} : memref<2x3x196xf32, #tpu.memory_space<vmem>>, vector<2x1x14xf32>,
    %442 = vector.extract_strided_slice %417 {offsets = [0, 96], sizes = [2, 14], strides = [1, 1]} : vector<2x222xf32> to vector<2x14xf32>
    %c0_56 = arith.constant 0 : index
    %c1_57 = arith.constant 1 : index
    %c84_58 = arith.constant 84 : index
    %443 = vector.load %arg3[%c0_56, %c1_57, %c84_58] : memref<2x3x196xf32, #tpu.memory_space<vmem>>, vector<2x1x14xf32>
    %444 = vector.shape_cast %443 : vector<2x1x14xf32> to vector<2x14xf32>
    %445 = vector.shape_cast %442 : vector<2x14xf32> to vector<2x1x14xf32>
    tpu.vector_store %arg3[%c0_56, %c1_57, %c84_58], %445 {strides = array<i32>} : memref<2x3x196xf32, #tpu.memory_space<vmem>>, vector<2x1x14xf32>,
    %446 = vector.extract_strided_slice %417 {offsets = [0, 112], sizes = [2, 14], strides = [1, 1]} : vector<2x222xf32> to vector<2x14xf32>
    %c0_59 = arith.constant 0 : index
    %c1_60 = arith.constant 1 : index
    %c98_61 = arith.constant 98 : index
    %447 = vector.load %arg3[%c0_59, %c1_60, %c98_61] : memref<2x3x196xf32, #tpu.memory_space<vmem>>, vector<2x1x14xf32>
    %448 = vector.shape_cast %447 : vector<2x1x14xf32> to vector<2x14xf32>
    %449 = vector.shape_cast %446 : vector<2x14xf32> to vector<2x1x14xf32>
    tpu.vector_store %arg3[%c0_59, %c1_60, %c98_61], %449 {strides = array<i32>} : memref<2x3x196xf32, #tpu.memory_space<vmem>>, vector<2x1x14xf32>,
    %450 = vector.extract_strided_slice %417 {offsets = [0, 128], sizes = [2, 14], strides = [1, 1]} : vector<2x222xf32> to vector<2x14xf32>
    %c0_62 = arith.constant 0 : index
    %c1_63 = arith.constant 1 : index
    %c112_64 = arith.constant 112 : index
    %451 = vector.load %arg3[%c0_62, %c1_63, %c112_64] : memref<2x3x196xf32, #tpu.memory_space<vmem>>, vector<2x1x14xf32>
    %452 = vector.shape_cast %451 : vector<2x1x14xf32> to vector<2x14xf32>
    %453 = vector.shape_cast %450 : vector<2x14xf32> to vector<2x1x14xf32>
    tpu.vector_store %arg3[%c0_62, %c1_63, %c112_64], %453 {strides = array<i32>} : memref<2x3x196xf32, #tpu.memory_space<vmem>>, vector<2x1x14xf32>,
    %454 = vector.extract_strided_slice %417 {offsets = [0, 144], sizes = [2, 14], strides = [1, 1]} : vector<2x222xf32> to vector<2x14xf32>
    %c0_65 = arith.constant 0 : index
    %c1_66 = arith.constant 1 : index
    %c126_67 = arith.constant 126 : index
    %455 = vector.load %arg3[%c0_65, %c1_66, %c126_67] : memref<2x3x196xf32, #tpu.memory_space<vmem>>, vector<2x1x14xf32>
    %456 = vector.shape_cast %455 : vector<2x1x14xf32> to vector<2x14xf32>
    %457 = vector.shape_cast %454 : vector<2x14xf32> to vector<2x1x14xf32>
    tpu.vector_store %arg3[%c0_65, %c1_66, %c126_67], %457 {strides = array<i32>} : memref<2x3x196xf32, #tpu.memory_space<vmem>>, vector<2x1x14xf32>,
    %458 = vector.extract_strided_slice %417 {offsets = [0, 160], sizes = [2, 14], strides = [1, 1]} : vector<2x222xf32> to vector<2x14xf32>
    %c0_68 = arith.constant 0 : index
    %c1_69 = arith.constant 1 : index
    %c140_70 = arith.constant 140 : index
    %459 = vector.load %arg3[%c0_68, %c1_69, %c140_70] : memref<2x3x196xf32, #tpu.memory_space<vmem>>, vector<2x1x14xf32>
    %460 = vector.shape_cast %459 : vector<2x1x14xf32> to vector<2x14xf32>
    %461 = vector.shape_cast %458 : vector<2x14xf32> to vector<2x1x14xf32>
    tpu.vector_store %arg3[%c0_68, %c1_69, %c140_70], %461 {strides = array<i32>} : memref<2x3x196xf32, #tpu.memory_space<vmem>>, vector<2x1x14xf32>,
    %462 = vector.extract_strided_slice %417 {offsets = [0, 176], sizes = [2, 14], strides = [1, 1]} : vector<2x222xf32> to vector<2x14xf32>
    %c0_71 = arith.constant 0 : index
    %c1_72 = arith.constant 1 : index
    %c154_73 = arith.constant 154 : index
    %463 = vector.load %arg3[%c0_71, %c1_72, %c154_73] : memref<2x3x196xf32, #tpu.memory_space<vmem>>, vector<2x1x14xf32>
    %464 = vector.shape_cast %463 : vector<2x1x14xf32> to vector<2x14xf32>
    %465 = vector.shape_cast %462 : vector<2x14xf32> to vector<2x1x14xf32>
    tpu.vector_store %arg3[%c0_71, %c1_72, %c154_73], %465 {strides = array<i32>} : memref<2x3x196xf32, #tpu.memory_space<vmem>>, vector<2x1x14xf32>,
    %466 = vector.extract_strided_slice %417 {offsets = [0, 192], sizes = [2, 14], strides = [1, 1]} : vector<2x222xf32> to vector<2x14xf32>
    %c0_74 = arith.constant 0 : index
    %c1_75 = arith.constant 1 : index
    %c168_76 = arith.constant 168 : index
    %467 = vector.load %arg3[%c0_74, %c1_75, %c168_76] : memref<2x3x196xf32, #tpu.memory_space<vmem>>, vector<2x1x14xf32>
    %468 = vector.shape_cast %467 : vector<2x1x14xf32> to vector<2x14xf32>
    %469 = vector.shape_cast %466 : vector<2x14xf32> to vector<2x1x14xf32>
    tpu.vector_store %arg3[%c0_74, %c1_75, %c168_76], %469 {strides = array<i32>} : memref<2x3x196xf32, #tpu.memory_space<vmem>>, vector<2x1x14xf32>,
    %470 = vector.extract_strided_slice %417 {offsets = [0, 208], sizes = [2, 14], strides = [1, 1]} : vector<2x222xf32> to vector<2x14xf32>
    %c0_77 = arith.constant 0 : index
    %c1_78 = arith.constant 1 : index
    %c182_79 = arith.constant 182 : index
    %471 = vector.load %arg3[%c0_77, %c1_78, %c182_79] : memref<2x3x196xf32, #tpu.memory_space<vmem>>, vector<2x1x14xf32>
    %472 = vector.shape_cast %471 : vector<2x1x14xf32> to vector<2x14xf32>
    %473 = vector.shape_cast %470 : vector<2x14xf32> to vector<2x1x14xf32>
    tpu.vector_store %arg3[%c0_77, %c1_78, %c182_79], %473 {strides = array<i32>} : memref<2x3x196xf32, #tpu.memory_space<vmem>>, vector<2x1x14xf32>,
    %474 = arith.addf %123, %237 : vector<2x222xf32>
    %475 = arith.addf %474, %351 : vector<2x222xf32>
    %c2_80 = arith.constant 2 : index
    %476 = memref.load %arg2[%c2_80] : memref<3xf32, #tpu.memory_space<smem>>
    %477 = vector.broadcast %476 : f32 to vector<2x222xf32>
    %478 = arith.addf %475, %477 : vector<2x222xf32>
    %479 = vector.extract_strided_slice %478 {offsets = [0, 0], sizes = [2, 14], strides = [1, 1]} : vector<2x222xf32> to vector<2x14xf32>
    %c0_81 = arith.constant 0 : index
    %c2_82 = arith.constant 2 : index
    %c0_83 = arith.constant 0 : index
    %480 = vector.load %arg3[%c0_81, %c2_82, %c0_83] : memref<2x3x196xf32, #tpu.memory_space<vmem>>, vector<2x1x14xf32>
    %481 = vector.shape_cast %480 : vector<2x1x14xf32> to vector<2x14xf32>
    %482 = vector.shape_cast %479 : vector<2x14xf32> to vector<2x1x14xf32>
    tpu.vector_store %arg3[%c0_81, %c2_82, %c0_83], %482 {strides = array<i32>} : memref<2x3x196xf32, #tpu.memory_space<vmem>>, vector<2x1x14xf32>,
    %483 = vector.extract_strided_slice %478 {offsets = [0, 16], sizes = [2, 14], strides = [1, 1]} : vector<2x222xf32> to vector<2x14xf32>
    %c0_84 = arith.constant 0 : index
    %c2_85 = arith.constant 2 : index
    %c14_86 = arith.constant 14 : index
    %484 = vector.load %arg3[%c0_84, %c2_85, %c14_86] : memref<2x3x196xf32, #tpu.memory_space<vmem>>, vector<2x1x14xf32>
    %485 = vector.shape_cast %484 : vector<2x1x14xf32> to vector<2x14xf32>
    %486 = vector.shape_cast %483 : vector<2x14xf32> to vector<2x1x14xf32>
    tpu.vector_store %arg3[%c0_84, %c2_85, %c14_86], %486 {strides = array<i32>} : memref<2x3x196xf32, #tpu.memory_space<vmem>>, vector<2x1x14xf32>,
    %487 = vector.extract_strided_slice %478 {offsets = [0, 32], sizes = [2, 14], strides = [1, 1]} : vector<2x222xf32> to vector<2x14xf32>
    %c0_87 = arith.constant 0 : index
    %c2_88 = arith.constant 2 : index
    %c28_89 = arith.constant 28 : index
    %488 = vector.load %arg3[%c0_87, %c2_88, %c28_89] : memref<2x3x196xf32, #tpu.memory_space<vmem>>, vector<2x1x14xf32>
    %489 = vector.shape_cast %488 : vector<2x1x14xf32> to vector<2x14xf32>
    %490 = vector.shape_cast %487 : vector<2x14xf32> to vector<2x1x14xf32>
    tpu.vector_store %arg3[%c0_87, %c2_88, %c28_89], %490 {strides = array<i32>} : memref<2x3x196xf32, #tpu.memory_space<vmem>>, vector<2x1x14xf32>,
    %491 = vector.extract_strided_slice %478 {offsets = [0, 48], sizes = [2, 14], strides = [1, 1]} : vector<2x222xf32> to vector<2x14xf32>
    %c0_90 = arith.constant 0 : index
    %c2_91 = arith.constant 2 : index
    %c42_92 = arith.constant 42 : index
    %492 = vector.load %arg3[%c0_90, %c2_91, %c42_92] : memref<2x3x196xf32, #tpu.memory_space<vmem>>, vector<2x1x14xf32>
    %493 = vector.shape_cast %492 : vector<2x1x14xf32> to vector<2x14xf32>
    %494 = vector.shape_cast %491 : vector<2x14xf32> to vector<2x1x14xf32>
    tpu.vector_store %arg3[%c0_90, %c2_91, %c42_92], %494 {strides = array<i32>} : memref<2x3x196xf32, #tpu.memory_space<vmem>>, vector<2x1x14xf32>,
    %495 = vector.extract_strided_slice %478 {offsets = [0, 64], sizes = [2, 14], strides = [1, 1]} : vector<2x222xf32> to vector<2x14xf32>
    %c0_93 = arith.constant 0 : index
    %c2_94 = arith.constant 2 : index
    %c56_95 = arith.constant 56 : index
    %496 = vector.load %arg3[%c0_93, %c2_94, %c56_95] : memref<2x3x196xf32, #tpu.memory_space<vmem>>, vector<2x1x14xf32>
    %497 = vector.shape_cast %496 : vector<2x1x14xf32> to vector<2x14xf32>
    %498 = vector.shape_cast %495 : vector<2x14xf32> to vector<2x1x14xf32>
    tpu.vector_store %arg3[%c0_93, %c2_94, %c56_95], %498 {strides = array<i32>} : memref<2x3x196xf32, #tpu.memory_space<vmem>>, vector<2x1x14xf32>,
    %499 = vector.extract_strided_slice %478 {offsets = [0, 80], sizes = [2, 14], strides = [1, 1]} : vector<2x222xf32> to vector<2x14xf32>
    %c0_96 = arith.constant 0 : index
    %c2_97 = arith.constant 2 : index
    %c70_98 = arith.constant 70 : index
    %500 = vector.load %arg3[%c0_96, %c2_97, %c70_98] : memref<2x3x196xf32, #tpu.memory_space<vmem>>, vector<2x1x14xf32>
    %501 = vector.shape_cast %500 : vector<2x1x14xf32> to vector<2x14xf32>
    %502 = vector.shape_cast %499 : vector<2x14xf32> to vector<2x1x14xf32>
    tpu.vector_store %arg3[%c0_96, %c2_97, %c70_98], %502 {strides = array<i32>} : memref<2x3x196xf32, #tpu.memory_space<vmem>>, vector<2x1x14xf32>,
    %503 = vector.extract_strided_slice %478 {offsets = [0, 96], sizes = [2, 14], strides = [1, 1]} : vector<2x222xf32> to vector<2x14xf32>
    %c0_99 = arith.constant 0 : index
    %c2_100 = arith.constant 2 : index
    %c84_101 = arith.constant 84 : index
    %504 = vector.load %arg3[%c0_99, %c2_100, %c84_101] : memref<2x3x196xf32, #tpu.memory_space<vmem>>, vector<2x1x14xf32>
    %505 = vector.shape_cast %504 : vector<2x1x14xf32> to vector<2x14xf32>
    %506 = vector.shape_cast %503 : vector<2x14xf32> to vector<2x1x14xf32>
    tpu.vector_store %arg3[%c0_99, %c2_100, %c84_101], %506 {strides = array<i32>} : memref<2x3x196xf32, #tpu.memory_space<vmem>>, vector<2x1x14xf32>,
    %507 = vector.extract_strided_slice %478 {offsets = [0, 112], sizes = [2, 14], strides = [1, 1]} : vector<2x222xf32> to vector<2x14xf32>
    %c0_102 = arith.constant 0 : index
    %c2_103 = arith.constant 2 : index
    %c98_104 = arith.constant 98 : index
    %508 = vector.load %arg3[%c0_102, %c2_103, %c98_104] : memref<2x3x196xf32, #tpu.memory_space<vmem>>, vector<2x1x14xf32>
    %509 = vector.shape_cast %508 : vector<2x1x14xf32> to vector<2x14xf32>
    %510 = vector.shape_cast %507 : vector<2x14xf32> to vector<2x1x14xf32>
    tpu.vector_store %arg3[%c0_102, %c2_103, %c98_104], %510 {strides = array<i32>} : memref<2x3x196xf32, #tpu.memory_space<vmem>>, vector<2x1x14xf32>,
    %511 = vector.extract_strided_slice %478 {offsets = [0, 128], sizes = [2, 14], strides = [1, 1]} : vector<2x222xf32> to vector<2x14xf32>
    %c0_105 = arith.constant 0 : index
    %c2_106 = arith.constant 2 : index
    %c112_107 = arith.constant 112 : index
    %512 = vector.load %arg3[%c0_105, %c2_106, %c112_107] : memref<2x3x196xf32, #tpu.memory_space<vmem>>, vector<2x1x14xf32>
    %513 = vector.shape_cast %512 : vector<2x1x14xf32> to vector<2x14xf32>
    %514 = vector.shape_cast %511 : vector<2x14xf32> to vector<2x1x14xf32>
    tpu.vector_store %arg3[%c0_105, %c2_106, %c112_107], %514 {strides = array<i32>} : memref<2x3x196xf32, #tpu.memory_space<vmem>>, vector<2x1x14xf32>,
    %515 = vector.extract_strided_slice %478 {offsets = [0, 144], sizes = [2, 14], strides = [1, 1]} : vector<2x222xf32> to vector<2x14xf32>
    %c0_108 = arith.constant 0 : index
    %c2_109 = arith.constant 2 : index
    %c126_110 = arith.constant 126 : index
    %516 = vector.load %arg3[%c0_108, %c2_109, %c126_110] : memref<2x3x196xf32, #tpu.memory_space<vmem>>, vector<2x1x14xf32>
    %517 = vector.shape_cast %516 : vector<2x1x14xf32> to vector<2x14xf32>
    %518 = vector.shape_cast %515 : vector<2x14xf32> to vector<2x1x14xf32>
    tpu.vector_store %arg3[%c0_108, %c2_109, %c126_110], %518 {strides = array<i32>} : memref<2x3x196xf32, #tpu.memory_space<vmem>>, vector<2x1x14xf32>,
    %519 = vector.extract_strided_slice %478 {offsets = [0, 160], sizes = [2, 14], strides = [1, 1]} : vector<2x222xf32> to vector<2x14xf32>
    %c0_111 = arith.constant 0 : index
    %c2_112 = arith.constant 2 : index
    %c140_113 = arith.constant 140 : index
    %520 = vector.load %arg3[%c0_111, %c2_112, %c140_113] : memref<2x3x196xf32, #tpu.memory_space<vmem>>, vector<2x1x14xf32>
    %521 = vector.shape_cast %520 : vector<2x1x14xf32> to vector<2x14xf32>
    %522 = vector.shape_cast %519 : vector<2x14xf32> to vector<2x1x14xf32>
    tpu.vector_store %arg3[%c0_111, %c2_112, %c140_113], %522 {strides = array<i32>} : memref<2x3x196xf32, #tpu.memory_space<vmem>>, vector<2x1x14xf32>,
    %523 = vector.extract_strided_slice %478 {offsets = [0, 176], sizes = [2, 14], strides = [1, 1]} : vector<2x222xf32> to vector<2x14xf32>
    %c0_114 = arith.constant 0 : index
    %c2_115 = arith.constant 2 : index
    %c154_116 = arith.constant 154 : index
    %524 = vector.load %arg3[%c0_114, %c2_115, %c154_116] : memref<2x3x196xf32, #tpu.memory_space<vmem>>, vector<2x1x14xf32>
    %525 = vector.shape_cast %524 : vector<2x1x14xf32> to vector<2x14xf32>
    %526 = vector.shape_cast %523 : vector<2x14xf32> to vector<2x1x14xf32>
    tpu.vector_store %arg3[%c0_114, %c2_115, %c154_116], %526 {strides = array<i32>} : memref<2x3x196xf32, #tpu.memory_space<vmem>>, vector<2x1x14xf32>,
    %527 = vector.extract_strided_slice %478 {offsets = [0, 192], sizes = [2, 14], strides = [1, 1]} : vector<2x222xf32> to vector<2x14xf32>
    %c0_117 = arith.constant 0 : index
    %c2_118 = arith.constant 2 : index
    %c168_119 = arith.constant 168 : index
    %528 = vector.load %arg3[%c0_117, %c2_118, %c168_119] : memref<2x3x196xf32, #tpu.memory_space<vmem>>, vector<2x1x14xf32>
    %529 = vector.shape_cast %528 : vector<2x1x14xf32> to vector<2x14xf32>
    %530 = vector.shape_cast %527 : vector<2x14xf32> to vector<2x1x14xf32>
    tpu.vector_store %arg3[%c0_117, %c2_118, %c168_119], %530 {strides = array<i32>} : memref<2x3x196xf32, #tpu.memory_space<vmem>>, vector<2x1x14xf32>,
    %531 = vector.extract_strided_slice %478 {offsets = [0, 208], sizes = [2, 14], strides = [1, 1]} : vector<2x222xf32> to vector<2x14xf32>
    %c0_120 = arith.constant 0 : index
    %c2_121 = arith.constant 2 : index
    %c182_122 = arith.constant 182 : index
    %532 = vector.load %arg3[%c0_120, %c2_121, %c182_122] : memref<2x3x196xf32, #tpu.memory_space<vmem>>, vector<2x1x14xf32>
    %533 = vector.shape_cast %532 : vector<2x1x14xf32> to vector<2x14xf32>
    %534 = vector.shape_cast %531 : vector<2x14xf32> to vector<2x1x14xf32>
    tpu.vector_store %arg3[%c0_120, %c2_121, %c182_122], %534 {strides = array<i32>} : memref<2x3x196xf32, #tpu.memory_space<vmem>>, vector<2x1x14xf32>,
    return
  }
}

</mosaic_0001>

<bundles_post_ra>
// kernel: conv2d_pallas.1
= control target key start
LH: loop header
LB: loop body
LE: loop exit
PB: predicated region body
PF: predicated region fallthrough
CT: control target
= control target key end

     0   :  { %8 = vsyncpa [#allocation3], 0  ;;  %s3249_s0 = inlined_call_operand.vmem [shape: f32[6,256], index: 0, kind: input, shape index: {}]   ;;  %s3250_s1 = inlined_call_operand.vmem [shape: f32[81], index: 1, kind: input, shape index: {}]   ;;  %s3251_s2 = inlined_call_operand.vmem [shape: f32[3], index: 2, kind: input, shape index: {}]   ;;  %s3252_s3 = inlined_call_operand.vmem [shape: f32[2,3,196], index: 3, kind: output, shape index: {}]  }
   0x1   :  { %s17_s14 = sshll.u32 %s3250_s1, 4  ;;  %s18_s14 = int_to_ptr.vmem [resolvable:$true] %s17_s14 }
   0x2   :  { %9 = vsyncpa [#allocation5], 0  ;;  %s26_s17 = sshll.u32 %s3251_s2, 4  ;;  %s1760_s18 = smov [#allocation2]   ;;  %s27_s17 = int_to_ptr.vmem [resolvable:$true] %s26_s17 }
   0x3   :  { %20 = dma.vmem_to_smem %s18_s14, 16, %s1760_s18, [#allocation3]  }
   0x4   :  { %s1761_s19 = smov [#allocation4]  }
   0x5   :  { %29 = dma.vmem_to_smem %s27_s17, 16, %s1761_s19, [#allocation5]  }
   0x6   :  { %1756 = dma.done.wait [#allocation3], 16  }
   0x7   :  { %1757 = vsyncadd [#allocation3], 4294967280 }
   0x8   :  { %1758 = dma.done.wait [#allocation5], 16  }
   0x9   :  { %1759 = vsyncadd [#allocation5], 4294967280 }
   0xa   :  { %38 = sfence }
   0xb   :  { %v1810_v0 = vld [vmem:[%s3249_s0] sm:$0x3f]  ;;  %s1633_s1 = sld [smem:[#allocation2 + $0x37]]  ;;  %vm47_vm0 = vcmask 1040384   ;;  %v1816_v2 = vld [vmem:[%s3249_s0 + $0x8] sm:$0x3f] }
   0xc   :  { %v3254_v1 = vrot.slane %v1810_v0, 2  ;;  %s1632_s2 = sld [smem:[#allocation2 + $0x1c]]  ;;  %v3253_v4 = vrot.slane %v1816_v2, 2  ;;  %s1762_s25 = smov 127   ;;  %vm272_vm1 = vcmask 900096   ;;  %vm88_vm2 = vcmask 1039360  }
   0xd   :  { %s1631_s22 = sld [smem:[#allocation2 + $0x1]]  ;;  %s1763_s28 = smov 126   ;;  %vm134_vm3 = vcmask 1031168   ;;  %vm180_vm4 = vcmask 916480   ;;  %vm226_vm5 = vcmask 908288   ;;  %vm318_vm6 = vcmask 785408  }
   0xe   :  { %v1822_v3 = vsel %vm47_vm0, %v1810_v0, %v3254_v1  ;;  %v1833_v11 = vsel %vm47_vm0, %v1816_v2, %v3253_v4  ;;  %s1635_s0 = sld [smem:[#allocation2 + $0x1d]]  ;;  %s1764_s5 = smov 112   ;;  %vm364_vm7 = vcmask 777216   ;;  %vm410_vm8 = vcmask 769024  }
   0xf   :  { %3274 = vst [vmem:[#allocation8_spill] sm:$0xff] %v1822_v3  ;;  %s1634_s26 = sld [smem:[#allocation2 + $0x2]]  ;;  %s1765_s9 = smov 111   ;;  %vm1201_vm9 = vcmask 106496   ;;  %vm1218_vm10 = vcmask 221296   ;;  %vm1227_vm11 = vcmask 336096  }
  0x10   :  { %s1636_s27 = sld [smem:[#allocation2 + $0x38]]  ;;  %s1766_s13 = smov 110   ;;  %vm1236_vm12 = vcmask 450896   ;;  %vm1245_vm13 = vcmask 565696   ;;  %vm1254_vm14 = vcmask 680496   ;;  %vm1263_vm15 = vcmask 795296  }
  0x11   :  { %v110_v5 = vstv %s1633_s1  ;;  %s1638_s29 = sld [smem:[#allocation2 + $0x1e]]  ;;  %s1767_s17 = smov 96  }
  0x12   :  { %v111_v6 = vmul.f32 %v110_v5, %v1822_v3  ;;  %v95_v7 = vstv %s1632_s2  ;;  %v112_v12 = vmul.f32 %v110_v5, %v1833_v11  ;;  %s1637_s30 = sld [smem:[#allocation2 + $0x3]]  ;;  %s1768_s21 = smov 95  }
  0x13   :  { %v96_v8 = vmul.f32 %v95_v7, %v1822_v3  ;;  %v79_v9 = vstv %s1631_s22  ;;  %v97_v13 = vmul.f32 %v95_v7, %v1833_v11  ;;  %s1639_s4 = sld [smem:[#allocation2 + $0x39]]  ;;  %s1769_s23 = smov 94  }
  0x14   :  { %115 = vrot.lane.b32.xlu2 %v111_v6, %s1762_s25  ;;  %v80_v10 = vmul.f32 %v79_v9, %v1822_v3  ;;  %v81_v14 = vmul.f32 %v79_v9, %v1833_v11  ;;  %v141_v15 = vstv %s1635_s0  ;;  %s1641_s6 = sld [smem:[#allocation2 + $0x1f]] }
  0x15   :  { %100 = vrot.lane.b32.xlu1 %v96_v8, %s1762_s25  ;;  %v125_v16 = vstv %s1634_s26  ;;  %v142_v17 = vmul.f32 %v141_v15, %v1822_v3  ;;  %v143_v23 = vmul.f32 %v141_v15, %v1833_v11  ;;  %s1640_s7 = sld [smem:[#allocation2 + $0x4]] }
  0x16   :  { %84 = vrot.lane.b32.xlu0 %v80_v10, %s1762_s25  ;;  %v127_v18 = vmul.f32 %v125_v16, %v1833_v11  ;;  %v126_v19 = vmul.f32 %v125_v16, %v1822_v3  ;;  %v156_v20 = vstv %s1636_s27  ;;  %s1642_s8 = sld [smem:[#allocation2 + $0x3a]] }
  0x17   :  { %v158_v21 = vmul.f32 %v156_v20, %v1833_v11  ;;  %v157_v22 = vmul.f32 %v156_v20, %v1822_v3  ;;  %v187_v24 = vstv %s1638_s29  ;;  %s1644_s10 = sld [smem:[#allocation2 + $0x20]] }
  0x18   :  { %v171_v25 = vstv %s1637_s30  ;;  %v188_v26 = vmul.f32 %v187_v24, %v1822_v3  ;;  %v189_v32 = vmul.f32 %v187_v24, %v1833_v11  ;;  %s1643_s11 = sld [smem:[#allocation2 + $0x5]] }
  0x19   :  { %v173_v27 = vmul.f32 %v171_v25, %v1833_v11  ;;  %v172_v28 = vmul.f32 %v171_v25, %v1822_v3  ;;  %v202_v29 = vstv %s1639_s4  ;;  %s1645_s12 = sld [smem:[#allocation2 + $0x3b]]  ;;  %v50_v25 = vrot.slane %v1810_v0, 1 }
  0x1a   :  { %v204_v30 = vmul.f32 %v202_v29, %v1833_v11  ;;  %v203_v31 = vmul.f32 %v202_v29, %v1822_v3  ;;  %v233_v33 = vstv %s1641_s6  ;;  %s1647_s14 = sld [smem:[#allocation2 + $0x21]]  ;;  %v55_v29 = vrot.slane %v1816_v2, 3 }
  0x1b   :  { %v217_v34 = vstv %s1640_s7  ;;  %v234_v35 = vmul.f32 %v233_v33, %v1822_v3  ;;  %v235_v41 = vmul.f32 %v233_v33, %v1833_v11  ;;  %s1646_s15 = sld [smem:[#allocation2 + $0x6]] }
  0x1c   :  { %117 = vrot.lane.b32.xlu2 %v112_v12, %s1762_s25  ;;  %v219_v36 = vmul.f32 %v217_v34, %v1833_v11  ;;  %v218_v37 = vmul.f32 %v217_v34, %v1822_v3  ;;  %v248_v38 = vstv %s1642_s8  ;;  %s1648_s16 = sld [smem:[#allocation2 + $0x3c]] }
  0x1d   :  { %102 = vrot.lane.b32.xlu1 %v97_v13, %s1762_s25  ;;  %v250_v39 = vmul.f32 %v248_v38, %v1833_v11  ;;  %v249_v40 = vmul.f32 %v248_v38, %v1822_v3  ;;  %v279_v42 = vstv %s1644_s10  ;;  %s1650_s18 = sld [smem:[#allocation2 + $0x22]] }
  0x1e   :  { %86 = vrot.lane.b32.xlu0 %v81_v14, %s1762_s25  ;;  %v263_v43 = vstv %s1643_s11  ;;  %v280_v44 = vmul.f32 %v279_v42, %v1822_v3  ;;  %v281_v50 = vmul.f32 %v279_v42, %v1833_v11  ;;  %s1649_s19 = sld [smem:[#allocation2 + $0x7]] }
  0x1f   :  { %v265_v45 = vmul.f32 %v263_v43, %v1833_v11  ;;  %v264_v46 = vmul.f32 %v263_v43, %v1822_v3  ;;  %v294_v47 = vstv %s1645_s12  ;;  %s1651_s20 = sld [smem:[#allocation2 + $0x3d]] }
  0x20   :  { %v296_v48 = vmul.f32 %v294_v47, %v1833_v11  ;;  %v295_v49 = vmul.f32 %v294_v47, %v1822_v3  ;;  %v325_v51 = vstv %s1647_s14  ;;  %s1910_s1 = sld [smem:[#allocation2 + $0x23]] }
  0x21   :  { %v309_v52 = vstv %s1646_s15  ;;  %v326_v53 = vmul.f32 %v325_v51, %v1822_v3  ;;  %v327_v59 = vmul.f32 %v325_v51, %v1833_v11  ;;  %s1652_s2 = sld [smem:[#allocation2 + $0x8]] }
  0x22   :  { %v311_v54 = vmul.f32 %v309_v52, %v1833_v11  ;;  %v310_v55 = vmul.f32 %v309_v52, %v1822_v3  ;;  %v340_v56 = vstv %s1648_s16  ;;  %s1654_s22 = sld [smem:[#allocation2 + $0x3e]] }
  0x23   :  { %v342_v57 = vmul.f32 %v340_v56, %v1833_v11  ;;  %v341_v58 = vmul.f32 %v340_v56, %v1822_v3  ;;  %v371_v60 = vstv %s1650_s18  ;;  %s1929_s24 = sld [smem:[#allocation2 + $0x25]] }
  0x24   :  { %146 = vrot.lane.b32.xlu2 %v142_v17, %s1763_s28  ;;  %v355_v62 = vstv %s1649_s19  ;;  %v372_v63 = vmul.f32 %v371_v60, %v1822_v3  ;;  %v373_v12 = vmul.f32 %v371_v60, %v1833_v11  ;;  %s1658_s0 = sld [smem:[#allocation2 + $0xa]] }
  0x25   :  { %132 = vrot.lane.b32.xlu1 %v127_v18, %s1763_s28  ;;  %v357_v5 = vmul.f32 %v355_v62, %v1833_v11  ;;  %v356_v6 = vmul.f32 %v355_v62, %v1822_v3  ;;  %v386_v7 = vstv %s1651_s20  ;;  %s1660_s26 = sld [smem:[#allocation2 + $0x40]] }
  0x26   :  { %130 = vrot.lane.b32.xlu0 %v126_v19, %s1763_s28  ;;  %v388_v9 = vmul.f32 %v386_v7, %v1833_v11  ;;  %v387_v10 = vmul.f32 %v386_v7, %v1822_v3  ;;  %v417_v13 = vstv %s1910_s1  ;;  %s1966_s27 = sld [smem:[#allocation2 + $0x26]] }
  0x27   :  { %v401_v15 = vstv %s1652_s2  ;;  %v418_v16 = vmul.f32 %v417_v13, %v1822_v3  ;;  %s1661_s29 = sld [smem:[#allocation2 + $0xb]] }
  0x28   :  { %v403_v17 = vmul.f32 %v401_v15, %v1833_v11  ;;  %v402_v18 = vmul.f32 %v401_v15, %v1822_v3  ;;  %v432_v19 = vstv %s1654_s22  ;;  %s1663_s30 = sld [smem:[#allocation2 + $0x41]] }
  0x29   :  { %v433_v24 = vmul.f32 %v432_v19, %v1822_v3  ;;  %s1993_s4 = sld [smem:[#allocation2 + $0x27]] }
  0x2a   :  { %v459_v34 = vstv %s1658_s0  ;;  %s1664_s6 = sld [smem:[#allocation2 + $0xc]] }
  0x2b   :  { %s1666_s7 = sld [smem:[#allocation2 + $0x42]] }
  0x2c   :  { %163 = vrot.lane.b32.xlu2 %v158_v21, %s1763_s28  ;;  %v519_v47 = vstv %s1966_s27  ;;  %s2020_s8 = sld [smem:[#allocation2 + $0x28]] }
  0x2d   :  { %161 = vrot.lane.b32.xlu1 %v157_v22, %s1763_s28  ;;  %s1667_s10 = sld [smem:[#allocation2 + $0xd]] }
  0x2e   :  { %148 = vrot.lane.b32.xlu0 %v143_v23, %s1763_s28  ;;  %v434_v23 = vmul.f32 %v432_v19, %v1833_v11  ;;  %s1669_s11 = sld [smem:[#allocation2 + $0x43]] }
  0x2f   :  { %s2047_s12 = sld [smem:[#allocation2 + $0x29]] }
  0x30   :  { %s1670_s14 = sld [smem:[#allocation2 + $0xe]] }
  0x31   :  { %v579_v15 = vstv %s1666_s7  ;;  %s1672_s15 = sld [smem:[#allocation2 + $0x44]] }
  0x32   :  { %s2074_s16 = sld [smem:[#allocation2 + $0x2a]] }
  0x33   :  { %s1673_s18 = sld [smem:[#allocation2 + $0xf]] }
  0x34   :  { %192 = vrot.lane.b32.xlu2 %v188_v26, %s1764_s5  ;;  %v54_v26 = vrot.slane %v1810_v0, 3  ;;  %s1675_s19 = sld [smem:[#allocation2 + $0x45]] }
  0x35   :  { %178 = vrot.lane.b32.xlu1 %v173_v27, %s1764_s5  ;;  %v419_v27 = vmul.f32 %v417_v13, %v1833_v11  ;;  %s2101_s20 = sld [smem:[#allocation2 + $0x2b]] }
  0x36   :  { %176 = vrot.lane.b32.xlu0 %v172_v28, %s1764_s5  ;;  %v51_v28 = vrot.slane %v1816_v2, 1  ;;  %s1676_s1 = sld [smem:[#allocation2 + $0x10]] }
  0x37   :  { %s1678_s2 = sld [smem:[#allocation2 + $0x46]] }
  0x38   :  { %v1955_v33 = vsel %vm47_vm0, %v51_v28, %v55_v29  ;;  %s2128_s22 = sld [smem:[#allocation2 + $0x2c]] }
  0x39   :  { %v461_v38 = vmul.f32 %v459_v34, %v1955_v33  ;;  %v521_v62 = vmul.f32 %v519_v47, %v1955_v33  ;;  %v581_v19 = vmul.f32 %v579_v15, %v1955_v33  ;;  %s1681_s0 = sld [smem:[#allocation2 + $0x47]] }
  0x3a   :  { %s1685_s27 = sld [smem:[#allocation2 + $0x13]] }
  0x3b   :  { %s1690_s7 = sld [smem:[#allocation2 + $0x4a]] }
  0x3c   :  { %209 = vrot.lane.b32.xlu2 %v204_v30, %s1764_s5  ;;  %v1948_v30 = vsel %vm47_vm0, %v50_v25, %v54_v26  ;;  %v609_v25 = vstv %s2020_s8  ;;  %s1691_s8 = sld [smem:[#allocation2 + $0x15]] }
  0x3d   :  { %207 = vrot.lane.b32.xlu1 %v203_v31, %s1764_s5  ;;  %v474_v31 = vstv %s1929_s24  ;;  %v520_v52 = vmul.f32 %v519_v47, %v1948_v30  ;;  %v611_v47 = vmul.f32 %v609_v25, %v1955_v33  ;;  %s1679_s24 = sld [smem:[#allocation2 + $0x11]] }
  0x3e   :  { %194 = vrot.lane.b32.xlu0 %v189_v32, %s1764_s5 }
  0x44   :  { %238 = vrot.lane.b32.xlu2 %v234_v35, %s1765_s9 }
  0x45   :  { %224 = vrot.lane.b32.xlu1 %v219_v36, %s1765_s9 }
  0x46   :  { %222 = vrot.lane.b32.xlu0 %v218_v37, %s1765_s9  ;;  %v475_v37 = vmul.f32 %v474_v31, %v1948_v30 }
  0x4c   :  { %255 = vrot.lane.b32.xlu2 %v250_v39, %s1765_s9  ;;  %v460_v39 = vmul.f32 %v459_v34, %v1948_v30 }
  0x4d   :  { %253 = vrot.lane.b32.xlu1 %v249_v40, %s1765_s9  ;;  %v489_v40 = vstv %s1660_s26  ;;  %s2155_s26 = sld [smem:[#allocation2 + $0x2e]] }
  0x4e   :  { %240 = vrot.lane.b32.xlu0 %v235_v41, %s1765_s9 }
  0x54   :  { %284 = vrot.lane.b32.xlu2 %v280_v44, %s1766_s13  ;;  %v491_v44 = vmul.f32 %v489_v40, %v1955_v33 }
  0x55   :  { %270 = vrot.lane.b32.xlu1 %v265_v45, %s1766_s13  ;;  %v490_v45 = vmul.f32 %v489_v40, %v1948_v30 }
  0x56   :  { %268 = vrot.lane.b32.xlu0 %v264_v46, %s1766_s13  ;;  %v476_v46 = vmul.f32 %v474_v31, %v1955_v33  ;;  %v610_v31 = vmul.f32 %v609_v25, %v1948_v30  ;;  %v684_v25 = vstv %s1673_s18  ;;  %s2290_s18 = sld [smem:[#allocation2 + $0x32]] }
  0x5c   :  { %301 = vrot.lane.b32.xlu2 %v296_v48, %s1766_s13 }
  0x5d   :  { %299 = vrot.lane.b32.xlu1 %v295_v49, %s1766_s13  ;;  %v504_v49 = vstv %s1661_s29  ;;  %s1687_s29 = sld [smem:[#allocation2 + $0x49]] }
  0x5e   :  { %286 = vrot.lane.b32.xlu0 %v281_v50, %s1766_s13 }
  0x64   :  { %330 = vrot.lane.b32.xlu2 %v326_v53, %s1767_s17  ;;  %v506_v53 = vmul.f32 %v504_v49, %v1955_v33 }
  0x65   :  { %316 = vrot.lane.b32.xlu1 %v311_v54, %s1767_s17  ;;  %v505_v54 = vmul.f32 %v504_v49, %v1948_v30  ;;  %v654_v49 = vstv %s2047_s12  ;;  %s1694_s12 = sld [smem:[#allocation2 + $0x16]] }
  0x66   :  { %314 = vrot.lane.b32.xlu0 %v310_v55, %s1767_s17  ;;  %v534_v55 = vstv %s1663_s30  ;;  %s2194_s30 = sld [smem:[#allocation2 + $0x2f]] }
  0x67   :  { %v535_v60 = vmul.f32 %v534_v55, %v1948_v30 }
  0x6c   :  { %347 = vrot.lane.b32.xlu2 %v342_v57, %s1767_s17 }
  0x6d   :  { %345 = vrot.lane.b32.xlu1 %v341_v58, %s1767_s17 }
  0x6e   :  { %332 = vrot.lane.b32.xlu0 %v327_v59, %s1767_s17  ;;  %v1903_v61 = vpop.permute.xlu2 %115  ;;  %v536_v59 = vmul.f32 %v534_v55, %v1955_v33 }
  0x6f   :  { %3275 = vst [vmem:[#allocation9_spill] sm:$0xff] %v1903_v61 }
  0x74   :  { %376 = vrot.lane.b32.xlu2 %v372_v63, %s1768_s21  ;;  %v564_v63 = vstv %s1993_s4  ;;  %s1688_s4 = sld [smem:[#allocation2 + $0x14]] }
  0x75   :  { %362 = vrot.lane.b32.xlu1 %v357_v5, %s1768_s21 }
  0x76   :  { %360 = vrot.lane.b32.xlu0 %v356_v6, %s1768_s21  ;;  %v1913_v8 = vpop.permute.xlu2 %117  ;;  %v549_v6 = vstv %s1664_s6  ;;  %s2205_s6 = sld [smem:[#allocation2 + $0x3f]] }
  0x77   :  { %3276 = vst [vmem:[#allocation10_spill] sm:$0xff] %v1913_v8  ;;  %v550_v13 = vmul.f32 %v549_v6, %v1948_v30 }
  0x7c   :  { %393 = vrot.lane.b32.xlu2 %v388_v9, %s1768_s21 }
  0x7d   :  { %391 = vrot.lane.b32.xlu1 %v387_v10, %s1768_s21  ;;  %v565_v10 = vmul.f32 %v564_v63, %v1948_v30 }
  0x7e   :  { %378 = vrot.lane.b32.xlu0 %v373_v12, %s1768_s21  ;;  %v1922_v14 = vpop.permute.xlu2 %146  ;;  %v551_v12 = vmul.f32 %v549_v6, %v1955_v33 }
  0x7f   :  { %3277 = vst [vmem:[#allocation11_spill] sm:$0xff] %v1922_v14 }
  0x84   :  { %422 = vrot.lane.b32.xlu2 %v418_v16, %s1769_s23 }
  0x85   :  { %408 = vrot.lane.b32.xlu1 %v403_v17, %s1769_s23 }
  0x86   :  { %406 = vrot.lane.b32.xlu0 %v402_v18, %s1769_s23  ;;  %v1932_v20 = vpop.permute.xlu2 %163 }
  0x87   :  { %3278 = vst [vmem:[#allocation12_spill] sm:$0xff] %v1932_v20  ;;  %v1934_v21 = vpop.permute.xlu1 %100 }
  0x88   :  { %3279 = vst [vmem:[#allocation13_spill] sm:$0xff] %v1934_v21  ;;  %v1936_v22 = vpop.permute.xlu0 %84 }
  0x89   :  { %3280 = vst [vmem:[#allocation14_spill] sm:$0xff] %v1936_v22 }
  0x8c   :  { %439 = vrot.lane.b32.xlu2 %v434_v23, %s1769_s23  ;;  %v580_v23 = vmul.f32 %v579_v15, %v1948_v30 }
  0x8d   :  { %437 = vrot.lane.b32.xlu1 %v433_v24, %s1769_s23  ;;  %v566_v24 = vmul.f32 %v564_v63, %v1955_v33  ;;  %v669_v63 = vstv %s1672_s15  ;;  %s2270_s15 = sld [smem:[#allocation2 + $0x36]] }
  0x8e   :  { %424 = vrot.lane.b32.xlu0 %v419_v27, %s1769_s23  ;;  %v1952_v32 = vpop.permute.xlu2 %192  ;;  %v594_v27 = vstv %s1667_s10  ;;  %v670_v15 = vmul.f32 %v669_v63, %v1948_v30  ;;  %s1693_s10 = sld [smem:[#allocation2 + $0x4b]] }
  0x8f   :  { %3281 = vst [vmem:[#allocation15_spill] sm:$0xff] %v1952_v32  ;;  %v1957_v35 = vpop.permute.xlu1 %102  ;;  %v596_v34 = vmul.f32 %v594_v27, %v1955_v33 }
  0x90   :  { %v1959_v36 = vpop.permute.xlu0 %86 }
  0x91   :  { %3282 = vst [vmem:[#allocation16_spill] sm:$0xff] %v1959_v36 }
  0x94   :  { %479 = vrot.lane.b32.xlu2 %v475_v37, %s1762_s25  ;;  %v595_v37 = vmul.f32 %v594_v27, %v1948_v30 }
  0x95   :  { %466 = vrot.lane.b32.xlu1 %v461_v38, %s1762_s25  ;;  %v624_v38 = vstv %s1669_s11  ;;  %s2258_s11 = sld [smem:[#allocation2 + $0x31]] }
  0x96   :  { %464 = vrot.lane.b32.xlu0 %v460_v39, %s1762_s25  ;;  %v1969_v41 = vpop.permute.xlu2 %209 }
  0x97   :  { %v1971_v42 = vpop.permute.xlu1 %132 }
  0x98   :  { %3283 = vst [vmem:[#allocation17_spill] sm:$0xff] %v1971_v42  ;;  %v1973_v43 = vpop.permute.xlu0 %130 }
  0x99   :  { %3284 = vst [vmem:[#allocation18_spill] sm:$0xff] %v1973_v43 }
  0x9c   :  { %496 = vrot.lane.b32.xlu2 %v491_v44, %s1762_s25 }
  0x9d   :  { %494 = vrot.lane.b32.xlu1 %v490_v45, %s1762_s25  ;;  %v626_v45 = vmul.f32 %v624_v38, %v1955_v33 }
  0x9e   :  { %481 = vrot.lane.b32.xlu0 %v476_v46, %s1762_s25  ;;  %v1982_v48 = vpop.permute.xlu2 %238  ;;  %v625_v46 = vmul.f32 %v624_v38, %v1948_v30  ;;  %v685_v38 = vmul.f32 %v684_v25, %v1948_v30 }
  0x9f   :  { %3285 = vst [vmem:[#allocation19_spill] sm:$0xff] %v1982_v48  ;;  %v1984_v50 = vpop.permute.xlu1 %161 }
  0xa0   :  { %3286 = vst [vmem:[#allocation20_spill] sm:$0xff] %v1984_v50  ;;  %v1986_v51 = vpop.permute.xlu0 %148 }
  0xa4   :  { %524 = vrot.lane.b32.xlu2 %v520_v52, %s1763_s28 }
  0xa5   :  { %511 = vrot.lane.b32.xlu1 %v506_v53, %s1763_s28  ;;  %v639_v53 = vstv %s1670_s14  ;;  %s2267_s14 = sld [smem:[#allocation2 + $0x24]] }
  0xa6   :  { %509 = vrot.lane.b32.xlu0 %v505_v54, %s1763_s28  ;;  %v1996_v56 = vpop.permute.xlu2 %255 }
  0xa7   :  { %v1998_v57 = vpop.permute.xlu1 %178 }
  0xa8   :  { %3287 = vst [vmem:[#allocation21_spill] sm:$0xff] %v1998_v57  ;;  %v2000_v58 = vpop.permute.xlu0 %176 }
  0xa9   :  { %3288 = vst [vmem:[#allocation22_spill] sm:$0xff] %v2000_v58 }
  0xab   :  { %v451_v50 = vstv %s2267_s14 }
  0xac   :  { %541 = vrot.lane.b32.xlu2 %v536_v59, %s1763_s28  ;;  %v655_v59 = vmul.f32 %v654_v49, %v1948_v30  ;;  %v453_v43 = vmul.f32 %v451_v50, %v1955_v33 }
  0xad   :  { %539 = vrot.lane.b32.xlu1 %v535_v60, %s1763_s28  ;;  %v641_v60 = vmul.f32 %v639_v53, %v1955_v33 }
  0xae   :  { %526 = vrot.lane.b32.xlu0 %v521_v62, %s1763_s28  ;;  %v2009_v5 = vpop.permute.xlu2 %284  ;;  %v640_v62 = vmul.f32 %v639_v53, %v1948_v30 }
  0xaf   :  { %3289 = vst [vmem:[#allocation23_spill] sm:$0xff] %v2009_v5  ;;  %v2011_v7 = vpop.permute.xlu1 %207 }
  0xb0   :  { %3290 = vst [vmem:[#allocation24_spill] sm:$0xff] %v2011_v7  ;;  %v2013_v9 = vpop.permute.xlu0 %194 }
  0xb4   :  { %569 = vrot.lane.b32.xlu2 %v565_v10, %s1764_s5 }
  0xb5   :  { %556 = vrot.lane.b32.xlu1 %v551_v12, %s1764_s5 }
  0xb6   :  { %554 = vrot.lane.b32.xlu0 %v550_v13, %s1764_s5  ;;  %v2023_v16 = vpop.permute.xlu2 %301  ;;  %v671_v13 = vmul.f32 %v669_v63, %v1955_v33 }
  0xb7   :  { %v2025_v17 = vpop.permute.xlu1 %224 }
  0xb8   :  { %3291 = vst [vmem:[#allocation25_spill] sm:$0xff] %v2025_v17  ;;  %v2027_v18 = vpop.permute.xlu0 %222 }
  0xb9   :  { %3292 = vst [vmem:[#allocation26_spill] sm:$0xff] %v2027_v18 }
  0xbc   :  { %586 = vrot.lane.b32.xlu2 %v581_v19, %s1764_s5  ;;  %v656_v19 = vmul.f32 %v654_v49, %v1955_v33 }
  0xbd   :  { %584 = vrot.lane.b32.xlu1 %v580_v23, %s1764_s5  ;;  %v699_v23 = vstv %s2074_s16  ;;  %s1696_s16 = sld [smem:[#allocation2 + $0x4c]] }
  0xbe   :  { %571 = vrot.lane.b32.xlu0 %v566_v24, %s1764_s5  ;;  %v2036_v26 = vpop.permute.xlu2 %330 }
  0xbf   :  { %3293 = vst [vmem:[#allocation27_spill] sm:$0xff] %v2036_v26  ;;  %v2038_v28 = vpop.permute.xlu1 %253  ;;  %v3313_v26 = vrot.slane %v1816_v2, 2 }
  0xc0   :  { %3294 = vst [vmem:[#allocation28_spill] sm:$0xff] %v2038_v28  ;;  %v2040_v29 = vpop.permute.xlu0 %240  ;;  %v921_v28 = vstv %s1691_s8  ;;  %s2733_s8 = sld [smem:[#allocation4 + $0x1]] }
  0xc4   :  { %614 = vrot.lane.b32.xlu2 %v610_v31, %s1765_s9 }
  0xc5   :  { %601 = vrot.lane.b32.xlu1 %v596_v34, %s1765_s9  ;;  %v700_v34 = vmul.f32 %v699_v23, %v1948_v30 }
  0xc6   :  { %599 = vrot.lane.b32.xlu0 %v595_v37, %s1765_s9  ;;  %v2050_v39 = vpop.permute.xlu2 %347  ;;  %v686_v37 = vmul.f32 %v684_v25, %v1955_v33 }
  0xc7   :  { %v2052_v40 = vpop.permute.xlu1 %270 }
  0xc8   :  { %3295 = vst [vmem:[#allocation29_spill] sm:$0xff] %v2052_v40  ;;  %v2054_v44 = vpop.permute.xlu0 %268 }
  0xc9   :  { %3296 = vst [vmem:[#allocation30_spill] sm:$0xff] %v2054_v44 }
  0xcc   :  { %631 = vrot.lane.b32.xlu2 %v626_v45, %s1765_s9  ;;  %v714_v45 = vstv %s1675_s19  ;;  %s1697_s19 = sld [smem:[#allocation2 + $0x17]] }
  0xcd   :  { %629 = vrot.lane.b32.xlu1 %v625_v46, %s1765_s9  ;;  %v716_v53 = vmul.f32 %v714_v45, %v1955_v33 }
  0xce   :  { %616 = vrot.lane.b32.xlu0 %v611_v47, %s1765_s9  ;;  %v2063_v52 = vpop.permute.xlu2 %376 }
  0xcf   :  { %3297 = vst [vmem:[#allocation31_spill] sm:$0xff] %v2063_v52  ;;  %v2065_v54 = vpop.permute.xlu1 %299 }
  0xd0   :  { %3298 = vst [vmem:[#allocation32_spill] sm:$0xff] %v2065_v54  ;;  %v2067_v55 = vpop.permute.xlu0 %286 }
  0xd4   :  { %659 = vrot.lane.b32.xlu2 %v655_v59, %s1766_s13  ;;  %v715_v59 = vmul.f32 %v714_v45, %v1948_v30 }
  0xd5   :  { %646 = vrot.lane.b32.xlu1 %v641_v60, %s1766_s13  ;;  %v701_v60 = vmul.f32 %v699_v23, %v1955_v33 }
  0xd6   :  { %644 = vrot.lane.b32.xlu0 %v640_v62, %s1766_s13  ;;  %v2077_v6 = vpop.permute.xlu2 %393  ;;  %v744_v62 = vstv %s2101_s20  ;;  %s2308_s20 = sld [smem:[#allocation2 + $0x9]] }
  0xd7   :  { %v2079_v10 = vpop.permute.xlu1 %316  ;;  %v745_v25 = vmul.f32 %v744_v62, %v1948_v30 }
  0xd8   :  { %3299 = vst [vmem:[#allocation33_spill] sm:$0xff] %v2079_v10  ;;  %v2081_v12 = vpop.permute.xlu0 %314 }
  0xd9   :  { %3300 = vst [vmem:[#allocation34_spill] sm:$0xff] %v2081_v12 }
  0xdc   :  { %676 = vrot.lane.b32.xlu2 %v671_v13, %s1766_s13  ;;  %v729_v13 = vstv %s1676_s1  ;;  %s2315_s1 = sld [smem:[#allocation2 + $0x4d]] }
  0xdd   :  { %674 = vrot.lane.b32.xlu1 %v670_v15, %s1766_s13  ;;  %v730_v23 = vmul.f32 %v729_v13, %v1948_v30 }
  0xde   :  { %661 = vrot.lane.b32.xlu0 %v656_v19, %s1766_s13  ;;  %v2090_v24 = vpop.permute.xlu2 %422 }
  0xdf   :  { %3301 = vst [vmem:[#allocation35_spill] sm:$0xff] %v2090_v24  ;;  %v2092_v27 = vpop.permute.xlu1 %345 }
  0xe0   :  { %3302 = vst [vmem:[#allocation36_spill] sm:$0xff] %v2092_v27  ;;  %v2094_v31 = vpop.permute.xlu0 %332  ;;  %v876_v27 = vstv %s1688_s4  ;;  %s1708_s4 = sld [smem:[#allocation2 + $0x50]] }
  0xe1   :  { %3303 = vst [vmem:[#allocation37_spill] sm:$0xff] %v2094_v31 }
  0xe4   :  { %704 = vrot.lane.b32.xlu2 %v700_v34, %s1767_s17  ;;  %v731_v34 = vmul.f32 %v729_v13, %v1955_v33  ;;  %v746_v13 = vmul.f32 %v744_v62, %v1955_v33 }
  0xe5   :  { %691 = vrot.lane.b32.xlu1 %v686_v37, %s1767_s17  ;;  %v759_v37 = vstv %s1678_s2  ;;  %s2355_s2 = sld [smem:[#allocation2 + $0x18]] }
  0xe6   :  { %689 = vrot.lane.b32.xlu0 %v685_v38, %s1767_s17  ;;  %v2104_v46 = vpop.permute.xlu2 %439 }
  0xe7   :  { %v2106_v47 = vpop.permute.xlu1 %362 }
  0xe8   :  { %3304 = vst [vmem:[#allocation38_spill] sm:$0xff] %v2106_v47  ;;  %v2108_v49 = vpop.permute.xlu0 %360 }
  0xe9   :  { %3305 = vst [vmem:[#allocation39_spill] sm:$0xff] %v2108_v49  ;;  %v831_v49 = vstv %s1685_s27  ;;  %s2444_s27 = sld [smem:[#allocation2 + $0x48]] }
  0xec   :  { %721 = vrot.lane.b32.xlu2 %v716_v53, %s1767_s17 }
  0xed   :  { %719 = vrot.lane.b32.xlu1 %v715_v59, %s1767_s17  ;;  %v761_v59 = vmul.f32 %v759_v37, %v1955_v33 }
  0xee   :  { %706 = vrot.lane.b32.xlu0 %v701_v60, %s1767_s17  ;;  %v2117_v63 = vpop.permute.xlu2 %479  ;;  %v760_v60 = vmul.f32 %v759_v37, %v1948_v30 }
  0xef   :  { %v2119_v15 = vpop.permute.xlu1 %391 }
  0xf0   :  { %3306 = vst [vmem:[#allocation40_spill] sm:$0xff] %v2119_v15  ;;  %v2121_v19 = vpop.permute.xlu0 %378  ;;  %v846_v15 = vstv %s2155_s26  ;;  %s2433_s26 = sld [smem:[#allocation2 + $0x19]] }
  0xf1   :  { %3307 = vst [vmem:[#allocation41_spill] sm:$0xff] %v2121_v19  ;;  %v447_v19 = vstv %s2308_s20 }
  0xf4   :  { %749 = vrot.lane.b32.xlu2 %v745_v25, %s1768_s21  ;;  %v789_v25 = vstv %s2128_s22  ;;  %s2394_s22 = sld [smem:[#allocation2 + $0x4e]] }
  0xf5   :  { %736 = vrot.lane.b32.xlu1 %v731_v34, %s1768_s21  ;;  %v790_v24 = vmul.f32 %v789_v25, %v1948_v30 }
  0xf6   :  { %734 = vrot.lane.b32.xlu0 %v730_v23, %s1768_s21  ;;  %v2131_v38 = vpop.permute.xlu2 %496  ;;  %v774_v23 = vstv %s1679_s24  ;;  %s2418_s24 = sld [smem:[#allocation2 + $0x1b]] }
  0xf7   :  { %v2133_v45 = vpop.permute.xlu1 %408  ;;  %v776_v37 = vmul.f32 %v774_v23, %v1955_v33  ;;  %v775_v62 = vmul.f32 %v774_v23, %v1948_v30 }
  0xf8   :  { %3308 = vst [vmem:[#allocation42_spill] sm:$0xff] %v2133_v45  ;;  %v2135_v53 = vpop.permute.xlu0 %406 }
  0xf9   :  { %3309 = vst [vmem:[#allocation43_spill] sm:$0xff] %v2135_v53  ;;  %v61_v53 = vrot.slane %v1816_v2, 4 }
  0xfc   :  { %766 = vrot.lane.b32.xlu2 %v761_v59, %s1768_s21  ;;  %v804_v59 = vstv %s1681_s0  ;;  %s2428_s0 = sld [smem:[#allocation2 + $0x34]] }
  0xfd   :  { %764 = vrot.lane.b32.xlu1 %v760_v60, %s1768_s21  ;;  %v806_v52 = vmul.f32 %v804_v59, %v1955_v33  ;;  %v805_v23 = vmul.f32 %v804_v59, %v1948_v30 }
  0xfe   :  { %751 = vrot.lane.b32.xlu0 %v746_v13, %s1768_s21  ;;  %v2144_v34 = vpop.permute.xlu2 %524 }
  0xff   :  { %v2146_v4 = vpop.permute.xlu1 %437 }
 0x100   :  { %3310 = vst [vmem:[#allocation44_spill] sm:$0xff] %v2146_v4  ;;  %v2148_v1 = vpop.permute.xlu0 %424 }
 0x101   :  { %3311 = vst [vmem:[#allocation45_spill] sm:$0xff] %v2148_v1  ;;  %v1026_v1 = vstv %s2290_s18 }
 0x104   :  { %794 = vrot.lane.b32.xlu2 %v790_v24, %s1769_s23  ;;  %v60_v24 = vrot.slane %v1810_v0, 4 }
 0x105   :  { %781 = vrot.lane.b32.xlu1 %v776_v37, %s1769_s23  ;;  %v791_v37 = vmul.f32 %v789_v25, %v1955_v33  ;;  %v2183_v25 = vsel %vm47_vm0, %v3313_v26, %v61_v53 }
 0x106   :  { %779 = vrot.lane.b32.xlu0 %v775_v62, %s1769_s23  ;;  %v2158_v60 = vpop.permute.xlu2 %541  ;;  %v3312_v62 = vrot.slane %v1810_v0, 2  ;;  %v878_v10 = vmul.f32 %v876_v27, %v2183_v25 }
 0x107   :  { %v2160_v13 = vpop.permute.xlu1 %466 }
 0x108   :  { %v2162_v4 = vpop.permute.xlu0 %464  ;;  %v2174_v45 = vsel %vm47_vm0, %v3312_v62, %v60_v24  ;;  %v833_v24 = vmul.f32 %v831_v49, %v2183_v25  ;;  %vm1272_vm0 = vcmask 910096  }
 0x109   :  { %v847_v0 = vmul.f32 %v846_v15, %v2174_v45  ;;  %v832_v62 = vmul.f32 %v831_v49, %v2174_v45 }
 0x10c   :  { %811 = vrot.lane.b32.xlu2 %v806_v52, %s1769_s23 }
 0x10d   :  { %809 = vrot.lane.b32.xlu1 %v805_v23, %s1769_s23 }
 0x10e   :  { %796 = vrot.lane.b32.xlu0 %v791_v37, %s1769_s23  ;;  %v2178_v59 = vpop.permute.xlu2 %569  ;;  %v861_v37 = vstv %s1687_s29  ;;  %s2450_s29 = sld [smem:[#allocation2 + $0x4f]] }
 0x10f   :  { %v2185_v52 = vpop.permute.xlu1 %494  ;;  %v863_v47 = vmul.f32 %v861_v37, %v2183_v25  ;;  %v862_v49 = vmul.f32 %v861_v37, %v2174_v45 }
 0x110   :  { %v2187_v23 = vpop.permute.xlu0 %481 }
 0x111   :  { %v487_v21 = vadd.f32 %v2187_v23, %v453_v43 }
 0x114   :  { %851 = vrot.lane.b32.xlu2 %v847_v0, %s1762_s25  ;;  %v848_v0 = vmul.f32 %v846_v15, %v2183_v25  ;;  %v3259_v15 = vstv %s2205_s6 }
 0x115   :  { %838 = vrot.lane.b32.xlu1 %v833_v24, %s1762_s25  ;;  %v891_v24 = vstv %s2194_s30  ;;  %s2479_s30 = sld [smem:[#allocation2 + $0x1a]] }
 0x116   :  { %836 = vrot.lane.b32.xlu0 %v832_v62, %s1762_s25  ;;  %v2197_v2 = vpop.permute.xlu2 %586  ;;  %v892_v12 = vmul.f32 %v891_v24, %v2174_v45 }
 0x117   :  { %v2199_v26 = vpop.permute.xlu1 %511 }
 0x118   :  { %v2201_v53 = vpop.permute.xlu0 %509 }
 0x11c   :  { %868 = vrot.lane.b32.xlu2 %v863_v47, %s1762_s25  ;;  %v877_v47 = vmul.f32 %v876_v27, %v2174_v45 }
 0x11d   :  { %866 = vrot.lane.b32.xlu1 %v862_v49, %s1762_s25  ;;  %v457_v49 = vmul.f32 %v3259_v15, %v1955_v33 }
 0x11e   :  { %853 = vrot.lane.b32.xlu0 %v848_v0, %s1762_s25  ;;  %v2212_v62 = vpop.permute.xlu2 %614  ;;  %v906_v0 = vstv %s1690_s7  ;;  %s2227_s25 = sld [smem:[#allocation2 + $0x30]] }
 0x11f   :  { %v2214_v5 = vpop.permute.xlu1 %539  ;;  %v502_v44 = vadd.f32 %v2131_v38, %v457_v49  ;;  %v908_v15 = vmul.f32 %v906_v0, %v2183_v25  ;;  %s2595_s7 = sld [smem:[#allocation4 + $0x2]] }
 0x120   :  { %v2216_v37 = vpop.permute.xlu0 %526 }
 0x121   :  { %v547_v48 = vadd.f32 %v2158_v60, %v502_v44  ;;  %v923_v44 = vmul.f32 %v921_v28, %v2183_v25  ;;  %v532_v3 = vadd.f32 %v2216_v37, %v487_v21 }
 0x123   :  { %v592_v18 = vadd.f32 %v2197_v2, %v547_v48 }
 0x124   :  { %896 = vrot.lane.b32.xlu2 %v892_v12, %s1763_s28  ;;  %v907_v12 = vmul.f32 %v906_v0, %v2174_v45 }
 0x125   :  { %883 = vrot.lane.b32.xlu1 %v878_v10, %s1763_s28  ;;  %v893_v10 = vmul.f32 %v891_v24, %v2183_v25 }
 0x126   :  { %881 = vrot.lane.b32.xlu0 %v877_v47, %s1763_s28  ;;  %v2230_v54 = vpop.permute.xlu2 %631  ;;  %v936_v47 = vstv %s2227_s25  ;;  %s2697_s25 = sld [smem:[#allocation4]] }
 0x127   :  { %v2233_v40 = vpop.permute.xlu1 %556  ;;  %v937_v24 = vmul.f32 %v936_v47, %v2174_v45 }
 0x128   :  { %v2235_v27 = vpop.permute.xlu0 %554 }
 0x12c   :  { %913 = vrot.lane.b32.xlu2 %v908_v15, %s1763_s28  ;;  %v922_v15 = vmul.f32 %v921_v28, %v2174_v45 }
 0x12d   :  { %911 = vrot.lane.b32.xlu1 %v907_v12, %s1763_s28  ;;  %v637_v12 = vadd.f32 %v2230_v54, %v592_v18 }
 0x12e   :  { %898 = vrot.lane.b32.xlu0 %v893_v10, %s1763_s28  ;;  %v2245_v49 = vpop.permute.xlu2 %659  ;;  %v951_v10 = vstv %s1693_s10 }
 0x12f   :  { %v2248_v17 = vpop.permute.xlu1 %584  ;;  %v953_v28 = vmul.f32 %v951_v10, %v2183_v25  ;;  %v952_v18 = vmul.f32 %v951_v10, %v2174_v45 }
 0x130   :  { %v2250_v0 = vpop.permute.xlu0 %571 }
 0x134   :  { %941 = vrot.lane.b32.xlu2 %v937_v24, %s1764_s5  ;;  %v938_v24 = vmul.f32 %v936_v47, %v2183_v25 }
 0x135   :  { %928 = vrot.lane.b32.xlu1 %v923_v44, %s1764_s5  ;;  %v981_v44 = vstv %s2258_s11 }
 0x136   :  { %926 = vrot.lane.b32.xlu0 %v922_v15, %s1764_s5  ;;  %v677_v48 = vpop.permute.xlu2 %676  ;;  %v982_v47 = vmul.f32 %v981_v44, %v2174_v45 }
 0x137   :  { %v682_v32 = vadd.f32 %v677_v48, %v637_v12  ;;  %v2261_v7 = vpop.permute.xlu1 %601  ;;  %v966_v12 = vstv %s1694_s12  ;;  %s1771_s12 = smov 124  }
 0x138   :  { %v2263_v58 = vpop.permute.xlu0 %599  ;;  %v968_v14 = vmul.f32 %v966_v12, %v2183_v25 }
 0x13c   :  { %958 = vrot.lane.b32.xlu2 %v953_v28, %s1764_s5  ;;  %v967_v28 = vmul.f32 %v966_v12, %v2174_v45 }
 0x13d   :  { %956 = vrot.lane.b32.xlu1 %v952_v18, %s1764_s5  ;;  %v3264_v18 = vstv %s2270_s15 }
 0x13e   :  { %943 = vrot.lane.b32.xlu0 %v938_v24, %s1764_s5  ;;  %v2276_v15 = vpop.permute.xlu2 %704  ;;  %v996_v24 = vstv %s1696_s16  ;;  %v77_v42 = vmul.f32 %v3264_v18, %v1833_v11 }
 0x13f   :  { %v2278_v10 = vpop.permute.xlu1 %629  ;;  %v997_v61 = vmul.f32 %v996_v24, %v2174_v45 }
 0x140   :  { %v2280_v57 = vpop.permute.xlu0 %616  ;;  %v123_v18 = vadd.f32 %v1913_v8, %v77_v42 }
 0x142   :  { %v169_v43 = vadd.f32 %v1932_v20, %v123_v18 }
 0x144   :  { %986 = vrot.lane.b32.xlu2 %v982_v47, %s1765_s9 }
 0x145   :  { %973 = vrot.lane.b32.xlu1 %v968_v14, %s1765_s9  ;;  %v998_v14 = vmul.f32 %v996_v24, %v2183_v25 }
 0x146   :  { %971 = vrot.lane.b32.xlu0 %v967_v28, %s1765_s9  ;;  %v2296_v22 = vpop.permute.xlu2 %721  ;;  %v983_v28 = vmul.f32 %v981_v44, %v2183_v25  ;;  %v1011_v44 = vstv %s1697_s19 }
 0x147   :  { %v727_v12 = vadd.f32 %v2296_v22, %v682_v32  ;;  %v2299_v47 = vpop.permute.xlu1 %646  ;;  %v577_v32 = vadd.f32 %v2250_v0, %v532_v3  ;;  %v1013_v18 = vmul.f32 %v1011_v44, %v2183_v25  ;;  %v1012_v20 = vmul.f32 %v1011_v44, %v2174_v45 }
 0x148   :  { %v2301_v36 = vpop.permute.xlu0 %644  ;;  %v1041_v44 = vstv %s2315_s1 }
 0x149   :  { %v622_v21 = vadd.f32 %v2280_v57, %v577_v32  ;;  %v3314_v32 = vstv %s2205_s6  ;;  %s1682_s6 = sld [smem:[#allocation2 + $0x12]] }
 0x14a   :  { %v456_v31 = vmul.f32 %v3314_v32, %v1948_v30 }
 0x14c   :  { %1003 = vrot.lane.b32.xlu2 %v998_v14, %s1765_s9  ;;  %v1027_v14 = vmul.f32 %v1026_v1, %v2174_v45 }
 0x14d   :  { %1001 = vrot.lane.b32.xlu1 %v997_v61, %s1765_s9 }
 0x14e   :  { %988 = vrot.lane.b32.xlu0 %v983_v28, %s1765_s9  ;;  %v2319_v42 = vpop.permute.xlu2 %749  ;;  %v215_v28 = vadd.f32 %v1969_v41, %v169_v43  ;;  %v483_v43 = vsel %vm88_vm2, %v2117_v63, %v2187_v23  ;;  %s2345_s9 = sld [smem:[#allocation2 + $0x33]]  ;;  %v448_v63 = vmul.f32 %v447_v19, %v1948_v30 }
 0x14f   :  { %v675_v24 = vpop.permute.xlu1 %674 }
 0x150   :  { %v2323_v3 = vsel %vm272_vm1, %v675_v24, %v677_v48  ;;  %v662_v61 = vpop.permute.xlu0 %661  ;;  %v498_v48 = vsel %vm88_vm2, %v2185_v52, %v2131_v38  ;;  %v452_v24 = vmul.f32 %v451_v50, %v1948_v30  ;;  %v449_v38 = vmul.f32 %v447_v19, %v1955_v33 }
 0x151   :  { %v2326_v8 = vadd.f32 %v662_v61, %v622_v21  ;;  %v261_v21 = vadd.f32 %v1996_v56, %v215_v28  ;;  %v543_v50 = vsel %vm134_vm3, %v2214_v5, %v2158_v60  ;;  %v501_v23 = vadd.f32 %v498_v48, %v456_v31 }
 0x152   :  { %v468_v5 = vsel %vm88_vm2, %v2162_v4, %v2160_v13  ;;  %v588_v60 = vsel %vm180_vm4, %v2248_v17, %v2197_v2  ;;  %v1043_v30 = vmul.f32 %v1041_v44, %v2183_v25  ;;  %v573_v19 = vsel %vm180_vm4, %v2178_v59, %v2250_v0 }
 0x153   :  { %v546_v31 = vadd.f32 %v543_v50, %v501_v23  ;;  %v307_v4 = vadd.f32 %v2023_v16, %v261_v21  ;;  %v633_v17 = vsel %vm226_vm5, %v2278_v10, %v2230_v54  ;;  %v1028_v2 = vmul.f32 %v1026_v1, %v2183_v25 }
 0x154   :  { %1031 = vrot.lane.b32.xlu2 %v1027_v14, %s1766_s13  ;;  %v528_v14 = vsel %vm134_vm3, %v2144_v34, %v2216_v37  ;;  %v1042_v37 = vmul.f32 %v1041_v44, %v2174_v45  ;;  %v472_v32 = vadd.f32 %v2160_v13, %v449_v38  ;;  %v618_v59 = vsel %vm226_vm5, %v2212_v62, %v2280_v57 }
 0x155   :  { %1018 = vrot.lane.b32.xlu1 %v1013_v18, %s1766_s13  ;;  %v591_v48 = vadd.f32 %v588_v60, %v546_v31  ;;  %v471_v0 = vadd.f32 %v468_v5, %v448_v63  ;;  %v663_v1 = vsel %vm272_vm1, %v2245_v49, %v662_v61  ;;  %v1071_v13 = vstv %s2345_s9 }
 0x156   :  { %1016 = vrot.lane.b32.xlu0 %v1012_v20, %s1766_s13  ;;  %v2353_v52 = vpop.permute.xlu2 %766  ;;  %v486_v20 = vadd.f32 %v483_v43, %v452_v24  ;;  %v513_v24 = vsel %vm134_vm3, %v2201_v53, %v2199_v26  ;;  %v517_v54 = vadd.f32 %v2199_v26, %v472_v32  ;;  %v353_v57 = vadd.f32 %v2050_v39, %v307_v4 }
 0x157   :  { %v2362_v18 = vadd.f32 %v2353_v52, %v727_v12  ;;  %v692_v33 = vpop.permute.xlu1 %691  ;;  %v636_v10 = vadd.f32 %v633_v17, %v591_v48  ;;  %v1056_v44 = vstv %s2355_s2  ;;  %v516_v21 = vadd.f32 %v513_v24, %v471_v0  ;;  %s1772_s2 = smov 122  }
 0x158   :  { %v690_v28 = vpop.permute.xlu0 %689  ;;  %v531_v12 = vadd.f32 %v528_v14, %v486_v20  ;;  %v562_v26 = vadd.f32 %v2233_v40, %v517_v54  ;;  %v558_v49 = vsel %vm180_vm4, %v2235_v27, %v2233_v40  ;;  %v603_v50 = vsel %vm226_vm5, %v2263_v58, %v2261_v7 }
 0x159   :  { %v693_v34 = vsel %vm318_vm6, %v690_v28, %v692_v33  ;;  %v681_v61 = vadd.f32 %v2323_v3, %v636_v10  ;;  %v1072_v5 = vmul.f32 %v1071_v13, %v2174_v45  ;;  %v1058_v27 = vmul.f32 %v1056_v44, %v2183_v25 }
 0x15a   :  { %v576_v43 = vadd.f32 %v573_v19, %v531_v12  ;;  %v561_v3 = vadd.f32 %v558_v49, %v516_v21  ;;  %v607_v28 = vadd.f32 %v2261_v7, %v562_v26 }
 0x15c   :  { %1048 = vrot.lane.b32.xlu2 %v1043_v30, %s1766_s13  ;;  %v621_v62 = vadd.f32 %v618_v59, %v576_v43  ;;  %v1057_v30 = vmul.f32 %v1056_v44, %v2174_v45  ;;  %v606_v31 = vadd.f32 %v603_v50, %v561_v3  ;;  %v652_v19 = vadd.f32 %v2299_v47, %v607_v28 }
 0x15d   :  { %1046 = vrot.lane.b32.xlu1 %v1042_v37, %s1766_s13  ;;  %v1073_v43 = vmul.f32 %v1071_v13, %v2183_v25 }
 0x15e   :  { %1033 = vrot.lane.b32.xlu0 %v1028_v2, %s1766_s13  ;;  %v2398_v53 = vpop.permute.xlu2 %794  ;;  %v666_v63 = vadd.f32 %v663_v1, %v621_v62  ;;  %v697_v37 = vadd.f32 %v692_v33, %v652_v19  ;;  %v1101_v1 = vstv %s2433_s26  ;;  %s1774_s26 = smov 120  }
 0x15f   :  { %v720_v38 = vpop.permute.xlu1 %719 }
 0x160   :  { %v723_v23 = vsel %vm318_vm6, %v720_v38, %v2296_v22  ;;  %v707_v14 = vpop.permute.xlu0 %706  ;;  %v648_v22 = vsel %vm272_vm1, %v2301_v36, %v2299_v47 }
 0x161   :  { %v726_v20 = vadd.f32 %v723_v23, %v681_v61  ;;  %v708_v60 = vsel %vm318_vm6, %v2276_v15, %v707_v14  ;;  %v712_v40 = vadd.f32 %v707_v14, %v2326_v8  ;;  %v399_v8 = vadd.f32 %v2077_v6, %v353_v57 }
 0x162   :  { %v711_v58 = vadd.f32 %v708_v60, %v666_v63  ;;  %v1086_v15 = vstv %s2394_s22  ;;  %v651_v7 = vadd.f32 %v648_v22, %v606_v31  ;;  %v1103_v61 = vmul.f32 %v1101_v1, %v2183_v25 }
 0x163   :  { %v445_v36 = vadd.f32 %v2104_v46, %v399_v8  ;;  %v1088_v33 = vmul.f32 %v1086_v15, %v2183_v25  ;;  %v1087_v0 = vmul.f32 %v1086_v15, %v2174_v45  ;;  %v1102_v63 = vmul.f32 %v1101_v1, %v2174_v45  ;;  %v3315_v15 = vld [vmem:[#allocation37_spill] sm:$0xff] }
 0x164   :  { %1076 = vrot.lane.b32.xlu2 %v1072_v5, %s1767_s17  ;;  %v696_v17 = vadd.f32 %v693_v34, %v651_v7  ;;  %v1116_v34 = vstv %s2428_s0  ;;  %v827_v23 = vstv %s2444_s27  ;;  %v1131_v5 = vstv %s2450_s29  ;;  %s1773_s0 = smov 118   ;;  %s1775_s27 = smov 116  }
 0x165   :  { %1063 = vrot.lane.b32.xlu1 %v1058_v27, %s1767_s17  ;;  %v1117_v44 = vmul.f32 %v1116_v34, %v2174_v45  ;;  %v829_v14 = vmul.f32 %v827_v23, %v2183_v25  ;;  %v1132_v22 = vmul.f32 %v1131_v5, %v2174_v45  ;;  %v1118_v8 = vmul.f32 %v1116_v34, %v2183_v25  ;;  %s1776_s29 = smov 114  }
 0x166   :  { %1061 = vrot.lane.b32.xlu0 %v1057_v30, %s1767_s17  ;;  %v2431_v4 = vpop.permute.xlu2 %811 }
 0x167   :  { %v817_v47 = vadd.f32 %v2431_v4, %v2362_v18  ;;  %v737_v12 = vpop.permute.xlu1 %736  ;;  %v71_v18 = vstv %s2418_s24 }
 0x168   :  { %v742_v2 = vadd.f32 %v737_v12, %v697_v37  ;;  %v735_v32 = vpop.permute.xlu0 %734  ;;  %v73_v54 = vmul.f32 %v71_v18, %v1833_v11 }
 0x169   :  { %v2439_v48 = vadd.f32 %v817_v47, %v445_v36  ;;  %v738_v59 = vsel %vm364_vm7, %v735_v32, %v737_v12  ;;  %v3316_v36 = vld [vmem:[#allocation41_spill] sm:$0xff] }
 0x16a   :  { %v741_v24 = vadd.f32 %v738_v59, %v696_v17  ;;  %v108_v38 = vadd.f32 %v1957_v35, %v73_v54  ;;  %v1146_v17 = vstv %s2479_s30  ;;  %v3317_v32 = vld [vmem:[#allocation45_spill] sm:$0xff]  ;;  %s1778_s30 = smov 108  }
 0x16b   :  { %v1148_v1 = vmul.f32 %v1146_v17, %v2183_v25 }
 0x16c   :  { %1093 = vrot.lane.b32.xlu2 %v1088_v33, %s1767_s17 }
 0x16d   :  { %1091 = vrot.lane.b32.xlu1 %v1087_v0, %s1767_s17 }
 0x16e   :  { %1078 = vrot.lane.b32.xlu0 %v1073_v43, %s1767_s17  ;;  %v2456_v10 = vpop.permute.xlu2 %851  ;;  %s2475_s17 = sld [smem:[#allocation2 + $0x35]] }
 0x16f   :  { %v765_v13 = vpop.permute.xlu1 %764 }
 0x170   :  { %v768_v57 = vsel %vm364_vm7, %v765_v13, %v2353_v52  ;;  %v752_v62 = vpop.permute.xlu0 %751  ;;  %v154_v52 = vadd.f32 %v1986_v51, %v108_v38 }
 0x171   :  { %v771_v21 = vadd.f32 %v768_v57, %v726_v20  ;;  %v753_v26 = vsel %vm364_vm7, %v2319_v42, %v752_v62  ;;  %v757_v49 = vadd.f32 %v752_v62, %v712_v40  ;;  %v1147_v57 = vmul.f32 %v1146_v17, %v2174_v45 }
 0x172   :  { %v756_v50 = vadd.f32 %v753_v26, %v711_v58  ;;  %v200_v42 = vadd.f32 %v2013_v9, %v154_v52  ;;  %v1133_v58 = vmul.f32 %v1131_v5, %v2183_v25  ;;  %v819_v5 = vstv %s1682_s6 }
 0x174   :  { %1121 = vrot.lane.b32.xlu2 %v1117_v44, %s1768_s21  ;;  %v246_v27 = vadd.f32 %v2040_v29, %v200_v42  ;;  %v1161_v37 = vstv %s2475_s17  ;;  %s1777_s17 = smov 106  }
 0x175   :  { %1108 = vrot.lane.b32.xlu1 %v1103_v61, %s1768_s21 }
 0x176   :  { %1106 = vrot.lane.b32.xlu0 %v1102_v63, %s1768_s21  ;;  %v869_v20 = vpop.permute.xlu2 %868  ;;  %v292_v31 = vadd.f32 %v2067_v55, %v246_v27 }
 0x177   :  { %v874_v60 = vadd.f32 %v869_v20, %v829_v14  ;;  %v782_v40 = vpop.permute.xlu1 %781 }
 0x178   :  { %v2482_v3 = vadd.f32 %v782_v40, %v742_v2  ;;  %v780_v28 = vpop.permute.xlu0 %779  ;;  %v338_v7 = vadd.f32 %v3315_v15, %v292_v31 }
 0x179   :  { %v783_v30 = vsel %vm410_vm8, %v780_v28, %v782_v40 }
 0x17a   :  { %v2488_v19 = vadd.f32 %v783_v30, %v741_v24  ;;  %v384_v47 = vadd.f32 %v3316_v36, %v338_v7  ;;  %v1162_v24 = vmul.f32 %v1161_v37, %v2174_v45  ;;  %v820_v30 = vmul.f32 %v819_v5, %v2174_v45 }
 0x17c   :  { %1138 = vrot.lane.b32.xlu2 %v1133_v58, %s1768_s21  ;;  %v430_v33 = vadd.f32 %v3317_v32, %v384_v47  ;;  %v821_v58 = vmul.f32 %v819_v5, %v2183_v25 }
 0x17d   :  { %1136 = vrot.lane.b32.xlu1 %v1132_v22, %s1768_s21 }
 0x17e   :  { %1123 = vrot.lane.b32.xlu0 %v1118_v8, %s1768_s21  ;;  %v897_v12 = vpop.permute.xlu2 %896  ;;  %s2510_s21 = sld [smem:[#allocation2 + $0x2d]] }
 0x17f   :  { %v810_v2 = vpop.permute.xlu1 %809 }
 0x180   :  { %v813_v59 = vsel %vm410_vm8, %v810_v2, %v2431_v4  ;;  %v797_v0 = vpop.permute.xlu0 %796  ;;  %v1176_v4 = vstv %s1708_s4  ;;  %s1779_s4 = smov 104  }
 0x181   :  { %v2502_v43 = vadd.f32 %v813_v59, %v771_v21  ;;  %v798_v34 = vsel %vm410_vm8, %v2398_v53, %v797_v0  ;;  %v802_v54 = vadd.f32 %v797_v0, %v757_v49  ;;  %v1178_v49 = vmul.f32 %v1176_v4, %v2183_v25 }
 0x182   :  { %v2507_v13 = vadd.f32 %v798_v34, %v756_v50  ;;  %v1177_v38 = vmul.f32 %v1176_v4, %v2174_v45  ;;  %v1163_v50 = vmul.f32 %v1161_v37, %v2183_v25 }
 0x183   :  { %3318 = vst [vmem:[#allocation37_spill] sm:$0xff] %v2502_v43  ;;  %v2512_v62 = vadd.f32 %v802_v54, %v430_v33  ;;  %v3339_v43 = vld [vmem:[#allocation24_spill] sm:$0xff] }
 0x184   :  { %3319 = vst [vmem:[#allocation41_spill] sm:$0xff] %v2507_v13  ;;  %1166 = vrot.lane.b32.xlu2 %v1162_v24, %s1769_s23  ;;  %v823_v63 = vstv %s2510_s21  ;;  %s1780_s21 = smov 102  }
 0x185   :  { %3320 = vst [vmem:[#allocation45_spill] sm:$0xff] %v2512_v62  ;;  %1153 = vrot.lane.b32.xlu1 %v1148_v1, %s1769_s23  ;;  %v825_v14 = vmul.f32 %v823_v63, %v2183_v25  ;;  %v3333_v62 = vld [vmem:[#allocation18_spill] sm:$0xff] }
 0x186   :  { %1151 = vrot.lane.b32.xlu0 %v1147_v57, %s1769_s23  ;;  %v914_v53 = vpop.permute.xlu2 %913 }
 0x187   :  { %v919_v44 = vadd.f32 %v914_v53, %v874_v60  ;;  %v839_v21 = vpop.permute.xlu1 %838 }
 0x188   :  { %v837_v26 = vpop.permute.xlu0 %836  ;;  %v844_v22 = vadd.f32 %v839_v21, %v821_v58 }
 0x189   :  { %v840_v61 = vsel %vm88_vm2, %v837_v26, %v839_v21 }
 0x18a   :  { %v843_v37 = vadd.f32 %v840_v61, %v820_v30 }
 0x18c   :  { %1183 = vrot.lane.b32.xlu2 %v1178_v49, %s1769_s23 }
 0x18d   :  { %1181 = vrot.lane.b32.xlu1 %v1177_v38, %s1769_s23 }
 0x18e   :  { %1168 = vrot.lane.b32.xlu0 %v1163_v50, %s1769_s23  ;;  %v942_v52 = vpop.permute.xlu2 %941  ;;  %s66_s23 = sld [smem:[#allocation2]] }
 0x18f   :  { %v867_v42 = vpop.permute.xlu1 %866 }
 0x190   :  { %v870_v60 = vsel %vm88_vm2, %v867_v42, %v869_v20  ;;  %v854_v40 = vpop.permute.xlu0 %853  ;;  %v828_v20 = vmul.f32 %v827_v23, %v2174_v45 }
 0x191   :  { %v855_v27 = vsel %vm88_vm2, %v2456_v10, %v854_v40  ;;  %v859_v28 = vadd.f32 %v854_v40, %v825_v14  ;;  %v824_v10 = vmul.f32 %v823_v63, %v2174_v45 }
 0x192   :  { %v873_v0 = vadd.f32 %v870_v60, %v828_v20 }
 0x193   :  { %v858_v24 = vadd.f32 %v855_v27, %v824_v10 }
 0x196   :  { %v959_v31 = vpop.permute.xlu2 %958 }
 0x197   :  { %v964_v8 = vadd.f32 %v959_v31, %v919_v44  ;;  %v884_v7 = vpop.permute.xlu1 %883 }
 0x198   :  { %v889_v47 = vadd.f32 %v884_v7, %v844_v22  ;;  %v882_v17 = vpop.permute.xlu0 %881 }
 0x199   :  { %v885_v2 = vsel %vm134_vm3, %v882_v17, %v884_v7 }
 0x19a   :  { %v888_v33 = vadd.f32 %v885_v2, %v843_v37 }
 0x19e   :  { %v987_v59 = vpop.permute.xlu2 %986 }
 0x19f   :  { %v912_v25 = vpop.permute.xlu1 %911 }
 0x1a0   :  { %v915_v34 = vsel %vm134_vm3, %v912_v25, %v914_v53  ;;  %v899_v54 = vpop.permute.xlu0 %898 }
 0x1a1   :  { %v918_v1 = vadd.f32 %v915_v34, %v873_v0  ;;  %v900_v57 = vsel %vm134_vm3, %v897_v12, %v899_v54  ;;  %v904_v4 = vadd.f32 %v899_v54, %v859_v28 }
 0x1a2   :  { %v903_v44 = vadd.f32 %v900_v57, %v858_v24 }
 0x1a6   :  { %v2538_v21 = vpop.permute.xlu2 %1003 }
 0x1a7   :  { %v1009_v26 = vadd.f32 %v2538_v21, %v964_v8  ;;  %v929_v49 = vpop.permute.xlu1 %928 }
 0x1a8   :  { %v934_v23 = vadd.f32 %v929_v49, %v889_v47  ;;  %v927_v61 = vpop.permute.xlu0 %926 }
 0x1a9   :  { %v930_v45 = vsel %vm180_vm4, %v927_v61, %v929_v49  ;;  %v3325_v61 = vstv %s2270_s15 }
 0x1aa   :  { %v2542_v38 = vadd.f32 %v930_v45, %v888_v33 }
 0x1ae   :  { %v2544_v50 = vpop.permute.xlu2 %1031 }
 0x1af   :  { %v957_v53 = vpop.permute.xlu1 %956 }
 0x1b0   :  { %v960_v63 = vsel %vm180_vm4, %v957_v53, %v959_v31  ;;  %v944_v14 = vpop.permute.xlu0 %943 }
 0x1b1   :  { %v2547_v12 = vadd.f32 %v960_v63, %v918_v1  ;;  %v945_v5 = vsel %vm180_vm4, %v942_v52, %v944_v14  ;;  %v949_v42 = vadd.f32 %v944_v14, %v904_v4  ;;  %v67_v4 = vstv %s66_s23  ;;  %v3326_v63 = vld [vmem:[#allocation10_spill] sm:$0xff]  ;;  %v3327_v14 = vld [vmem:[#allocation9_spill] sm:$0xff] }
 0x1b2   :  { %v948_v60 = vadd.f32 %v945_v5, %v903_v44  ;;  %v69_v53 = vmul.f32 %v67_v4, %v1833_v11  ;;  %v119_v5 = vsel %vm88_vm2, %v3327_v14, %v3326_v63 }
 0x1b6   :  { %v2550_v40 = vpop.permute.xlu2 %1048 }
 0x1b7   :  { %v1054_v27 = vadd.f32 %v2550_v40, %v1009_v26  ;;  %v2553_v28 = vpop.permute.xlu1 %973 }
 0x1b8   :  { %v979_v58 = vadd.f32 %v2553_v28, %v934_v23  ;;  %v2556_v30 = vpop.permute.xlu0 %971  ;;  %v3324_v23 = vld [vmem:[#allocation8_spill] sm:$0xff] }
 0x1b9   :  { %v76_v45 = vmul.f32 %v3325_v61, %v3324_v23 }
 0x1be   :  { %v2558_v22 = vpop.permute.xlu2 %1076 }
 0x1bf   :  { %v2560_v31 = vpop.permute.xlu1 %1001 }
 0x1c0   :  { %v989_v8 = vpop.permute.xlu0 %988 }
 0x1c1   :  { %v990_v7 = vsel %vm226_vm5, %v987_v59, %v989_v8  ;;  %v994_v52 = vadd.f32 %v989_v8, %v949_v42  ;;  %v72_v42 = vmul.f32 %v71_v18, %v3324_v23  ;;  %v3329_v8 = vld [vmem:[#allocation16_spill] sm:$0xff]  ;;  %v3332_v18 = vld [vmem:[#allocation17_spill] sm:$0xff] }
 0x1c2   :  { %v2563_v37 = vadd.f32 %v990_v7, %v948_v60  ;;  %v3328_v60 = vld [vmem:[#allocation13_spill] sm:$0xff]  ;;  %v3330_v7 = vld [vmem:[#allocation14_spill] sm:$0xff]  ;;  %v93_v61 = vadd.f32 %v3329_v8, %v69_v53  ;;  %v3336_v53 = vld [vmem:[#allocation11_spill] sm:$0xff] }
 0x1c6   :  { %v2565_v47 = vpop.permute.xlu2 %1093 }
 0x1c7   :  { %v1099_v17 = vadd.f32 %v2565_v47, %v1054_v27  ;;  %v2568_v2 = vpop.permute.xlu1 %1018  ;;  %v104_v27 = vsel %vm88_vm2, %v3328_v60, %v1957_v35  ;;  %v3334_v35 = vld [vmem:[#allocation12_spill] sm:$0xff] }
 0x1c8   :  { %v2571_v33 = vadd.f32 %v2568_v2, %v979_v58  ;;  %v2573_v20 = vpop.permute.xlu0 %1016  ;;  %v68_v58 = vmul.f32 %v67_v4, %v3324_v23  ;;  %v107_v14 = vadd.f32 %v104_v27, %v72_v42  ;;  %v3335_v60 = vld [vmem:[#allocation20_spill] sm:$0xff]  ;;  %v3341_v42 = vld [vmem:[#allocation25_spill] sm:$0xff] }
 0x1c9   :  { %v165_v4 = vsel %vm134_vm3, %v3335_v60, %v3334_v35  ;;  %v211_v35 = vsel %vm180_vm4, %v3339_v43, %v1969_v41 }
 0x1ce   :  { %v2575_v10 = vpop.permute.xlu2 %1121 }
 0x1cf   :  { %3321 = vst [vmem:[#allocation46_spill] sm:$0xff] %v2575_v10  ;;  %v2577_v0 = vpop.permute.xlu1 %1046  ;;  %v3343_v10 = vstv %s2595_s7 }
 0x1d0   :  { %v2579_v59 = vpop.permute.xlu0 %1033 }
 0x1d1   :  { %v1039_v25 = vadd.f32 %v2579_v59, %v994_v52  ;;  %v89_v52 = vsel %vm88_vm2, %v3330_v7, %v3329_v8  ;;  %v3337_v8 = vld [vmem:[#allocation21_spill] sm:$0xff]  ;;  %vm1291_vm2 = vcmask 1024896  }
 0x1d2   :  { %v92_v7 = vadd.f32 %v89_v52, %v68_v58 }
 0x1d6   :  { %v2582_v24 = vpop.permute.xlu2 %1138 }
 0x1d7   :  { %3322 = vst [vmem:[#allocation47_spill] sm:$0xff] %v2582_v24  ;;  %v1144_v34 = vadd.f32 %v2582_v24, %v1099_v17  ;;  %v2585_v54 = vpop.permute.xlu1 %1063  ;;  %v1770_v17 = vmov 286326784  }
 0x1d8   :  { %v2587_v1 = vpop.permute.xlu0 %1061  ;;  %v1205_v11 = vunpack.c.l.s4 %v1770_v17  ;;  %v3338_v17 = vld [vmem:[#allocation22_spill] sm:$0xff] }
 0x1de   :  { %v2589_v57 = vpop.permute.xlu2 %1166 }
 0x1df   :  { %3323 = vst [vmem:[#allocation48_spill] sm:$0xff] %v2589_v57  ;;  %v2591_v44 = vpop.permute.xlu1 %1091  ;;  %v135_v57 = vsel %vm134_vm3, %v3333_v62, %v3332_v18  ;;  %v181_v62 = vsel %vm180_vm4, %v3338_v17, %v3337_v8 }
 0x1e0   :  { %v2593_v26 = vpop.permute.xlu0 %1078  ;;  %v138_v52 = vadd.f32 %v135_v57, %v92_v7 }
 0x1e1   :  { %v1084_v49 = vadd.f32 %v2593_v26, %v1039_v25  ;;  %v122_v25 = vadd.f32 %v119_v5, %v76_v45  ;;  %v139_v45 = vadd.f32 %v3332_v18, %v93_v61  ;;  %v150_v5 = vsel %vm134_vm3, %v3336_v53, %v1986_v51  ;;  %v3340_v51 = vld [vmem:[#allocation15_spill] sm:$0xff] }
 0x1e2   :  { %v153_v60 = vadd.f32 %v150_v5, %v107_v14  ;;  %v196_v53 = vsel %vm180_vm4, %v3340_v51, %v2013_v9  ;;  %v184_v41 = vadd.f32 %v181_v62, %v138_v52  ;;  %v3347_v9 = vld [vmem:[#allocation30_spill] sm:$0xff]  ;;  %v3348_v5 = vld [vmem:[#allocation32_spill] sm:$0xff]  ;;  %v3349_v52 = vld [vmem:[#allocation33_spill] sm:$0xff]  ;;  %vm1304_vm3 = vcmask 1041392  }
 0x1e3   :  { %v168_v61 = vadd.f32 %v165_v4, %v122_v25  ;;  %v185_v18 = vadd.f32 %v3337_v8, %v139_v45  ;;  %v3345_v25 = vld [vmem:[#allocation19_spill] sm:$0xff]  ;;  %v3346_v4 = vld [vmem:[#allocation29_spill] sm:$0xff]  ;;  %vm1305_vm4 = vcmask 94212  }
 0x1e4   :  { %v242_v14 = vsel %vm226_vm5, %v3345_v25, %v2040_v29  ;;  %v975_v29 = vsel %vm226_vm5, %v2556_v30, %v2553_v28  ;;  %v3351_v28 = vld [vmem:[#allocation23_spill] sm:$0xff] }
 0x1e5   :  { %v214_v43 = vadd.f32 %v211_v35, %v168_v61  ;;  %v3350_v61 = vld [vmem:[#allocation34_spill] sm:$0xff]  ;;  %v288_v30 = vsel %vm272_vm1, %v3351_v28, %v2067_v55  ;;  %v978_v25 = vadd.f32 %v975_v29, %v2542_v38  ;;  %v1065_v55 = vsel %vm318_vm6, %v2587_v1, %v2585_v54 }
 0x1e6   :  { %v2616_v63 = vpop.permute.xlu2 %1183 }
 0x1e7   :  { %3331 = vst [vmem:[#allocation8_spill] sm:$0xff] %v2616_v63  ;;  %v1189_v23 = vadd.f32 %v2616_v63, %v1144_v34  ;;  %v1109_v13 = vpop.permute.xlu1 %1108  ;;  %v2636_v34 = vunpack.c.0.s8 %v1205_v11  ;;  %v3342_v63 = vld [vmem:[#allocation26_spill] sm:$0xff]  ;;  %v231_v11 = vadd.f32 %v3341_v42, %v185_v18  ;;  %v319_v18 = vsel %vm318_vm6, %v3350_v61, %v3349_v52 }
 0x1e8   :  { %v1107_v27 = vpop.permute.xlu0 %1106  ;;  %v227_v17 = vsel %vm226_vm5, %v3342_v63, %v3341_v42  ;;  %v303_v42 = vsel %vm272_vm1, %v3348_v5, %v2023_v16 }
 0x1e9   :  { %v1487_v58 = vadd.f32 %v2439_v48, %v1189_v23  ;;  %v3344_v48 = vld [vmem:[#allocation28_spill] sm:$0xff]  ;;  %v273_v23 = vsel %vm272_vm1, %v3347_v9, %v3346_v4  ;;  %v230_v45 = vadd.f32 %v227_v17, %v184_v41  ;;  %v3357_v9 = vld [vmem:[#allocation42_spill] sm:$0xff] }
 0x1ea   :  { %v257_v57 = vsel %vm226_vm5, %v3344_v48, %v1996_v56  ;;  %v277_v56 = vadd.f32 %v3346_v4, %v231_v11  ;;  %v3352_v41 = vld [vmem:[#allocation36_spill] sm:$0xff]  ;;  %v3353_v11 = vld [vmem:[#allocation38_spill] sm:$0xff]  ;;  %v3354_v48 = vld [vmem:[#allocation39_spill] sm:$0xff] }
 0x1eb   :  { %v1491_v24 = vadd.f32 %v3343_v10, %v1487_v58  ;;  %v199_v10 = vadd.f32 %v196_v53, %v153_v60  ;;  %v260_v8 = vadd.f32 %v257_v57, %v214_v43  ;;  %v1020_v53 = vsel %vm272_vm1, %v2573_v20, %v2568_v2  ;;  %v3355_v4 = vld [vmem:[#allocation27_spill] sm:$0xff] }
 0x1ec   :  { %v323_v16 = vadd.f32 %v3349_v52, %v277_v56  ;;  %v349_v43 = vsel %vm318_vm6, %v3352_v41, %v2050_v39  ;;  %v365_v57 = vsel %vm364_vm7, %v3354_v48, %v3353_v11  ;;  %v334_v2 = vsel %vm318_vm6, %v3355_v4, %v3315_v15  ;;  %v3356_v39 = vld [vmem:[#allocation40_spill] sm:$0xff]  ;;  %v3359_v52 = vld [vmem:[#allocation31_spill] sm:$0xff]  ;;  %v3364_v4 = vld [vmem:[#allocation37_spill] sm:$0xff] }
 0x1ed   :  { %v1562_v7 = vrot.slane %v1491_v24, 1  ;;  %v2659_v63 = vperm.slane %v1491_v24, %v2636_v34  ;;  %v245_v58 = vadd.f32 %v242_v14, %v199_v10  ;;  %v276_v24 = vadd.f32 %v273_v23, %v230_v45  ;;  %v3358_v23 = vld [vmem:[#allocation43_spill] sm:$0xff] }
 0x1ee   :  { %v306_v51 = vadd.f32 %v303_v42, %v260_v8  ;;  %v369_v20 = vadd.f32 %v3353_v11, %v323_v16  ;;  %v411_v38 = vsel %vm410_vm8, %v3358_v23, %v3357_v9  ;;  %v1069_v15 = vadd.f32 %v2585_v54, %v2571_v33 }
 0x1ef   :  { %v2669_v62 = vperm.slane %v1562_v7, %v2636_v34  ;;  %v1137_v35 = vpop.permute.xlu1 %1136  ;;  %v322_v14 = vadd.f32 %v319_v18, %v276_v24  ;;  %v1023_v7 = vadd.f32 %v1020_v53, %v978_v25  ;;  %v291_v10 = vadd.f32 %v288_v30, %v245_v58  ;;  %v3361_v30 = vld [vmem:[#allocation35_spill] sm:$0xff] }
 0x1f0   :  { %v1124_v60 = vpop.permute.xlu0 %1123  ;;  %v352_v45 = vadd.f32 %v349_v43, %v306_v51  ;;  %v1110_v42 = vsel %vm364_vm7, %v1107_v27, %v1109_v13  ;;  %v415_v1 = vadd.f32 %v3357_v9, %v369_v20  ;;  %v1005_v8 = vsel %vm226_vm5, %v2560_v31, %v2538_v21  ;;  %vm2945_vm5 = vmor %vm1305_vm4, %vm1304_vm3 }
 0x1f1   :  { %v2678_v17 = vadd.f32 %v1124_v60, %v1084_v49  ;;  %v395_v49 = vsel %vm364_vm7, %v3356_v39, %v2077_v6  ;;  %v368_v5 = vadd.f32 %v365_v57, %v322_v14  ;;  %v1068_v6 = vadd.f32 %v1065_v55, %v1023_v7  ;;  %v3363_v57 = vld [vmem:[#allocation46_spill] sm:$0xff]  ;;  %v3365_v39 = vld [vmem:[#allocation8_spill] sm:$0xff] }
 0x1f2   :  { %v1114_v56 = vadd.f32 %v1109_v13, %v1069_v15  ;;  %v337_v29 = vadd.f32 %v334_v2, %v291_v10  ;;  %v398_v24 = vadd.f32 %v395_v49, %v352_v45  ;;  %v380_v61 = vsel %vm364_vm7, %v3359_v52, %v3316_v36  ;;  %v3360_v13 = vld [vmem:[#allocation44_spill] sm:$0xff] }
 0x1f3   :  { %v414_v33 = vadd.f32 %v411_v38, %v368_v5  ;;  %v1191_v58 = vadd.f32 %v2482_v3, %v415_v1  ;;  %v1050_v27 = vsel %vm272_vm1, %v2577_v0, %v2550_v40  ;;  %v1113_v18 = vadd.f32 %v1110_v42, %v1068_v6  ;;  %v3367_v7 = vld [vmem:[#allocation48_spill] sm:$0xff] }
 0x1f4   :  { %v441_v31 = vsel %vm410_vm8, %v3360_v13, %v2104_v46  ;;  %v1008_v16 = vadd.f32 %v1005_v8, %v2547_v12  ;;  %v1035_v36 = vsel %vm272_vm1, %v2544_v50, %v2579_v59  ;;  %v1095_v40 = vsel %vm318_vm6, %v2591_v44, %v2565_v47  ;;  %v3362_v47 = vld [vmem:[#allocation47_spill] sm:$0xff]  ;;  %v3368_v8 = vld [vmem:[#allocation45_spill] sm:$0xff] }
 0x1f5   :  { %v1190_v53 = vadd.f32 %v2488_v19, %v414_v33  ;;  %v383_v46 = vadd.f32 %v380_v61, %v337_v29  ;;  %v1080_v50 = vsel %vm318_vm6, %v2558_v22, %v2593_v26  ;;  %v1195_v59 = vstv %s2697_s25 }
 0x1f6   :  { %v1053_v12 = vadd.f32 %v1050_v27, %v1008_v16  ;;  %v426_v19 = vsel %vm410_vm8, %v3361_v30, %v3317_v32  ;;  %v1038_v41 = vadd.f32 %v1035_v36, %v2563_v37  ;;  %v1140_v44 = vsel %vm364_vm7, %v1137_v35, %v3362_v47 }
 0x1f7   :  { %v1154_v54 = vpop.permute.xlu1 %1153  ;;  %v444_v11 = vadd.f32 %v441_v31, %v398_v24  ;;  %v1125_v25 = vsel %vm364_vm7, %v3363_v57, %v1124_v60  ;;  %v429_v26 = vadd.f32 %v426_v19, %v383_v46  ;;  %v3366_v60 = vld [vmem:[#allocation41_spill] sm:$0xff]  ;;  %v1350_v5 = vstv %s2733_s8 }
 0x1f8   :  { %v1159_v51 = vadd.f32 %v1154_v54, %v1114_v56  ;;  %v1152_v21 = vpop.permute.xlu0 %1151  ;;  %v1098_v48 = vadd.f32 %v1095_v40, %v1053_v12  ;;  %v1083_v14 = vadd.f32 %v1080_v50, %v1038_v41  ;;  %vm1315_vm6 = vcmask 204896  }
 0x1f9   :  { %v1155_v3 = vsel %vm410_vm8, %v1152_v21, %v1154_v54  ;;  %v1484_v2 = vadd.f32 %v3364_v4, %v444_v11  ;;  %v1345_v23 = vadd.f32 %v3366_v60, %v429_v26  ;;  %vm1324_vm7 = vcmask 319696  }
 0x1fa   :  { %v2731_v0 = vadd.f32 %v1191_v58, %v1159_v51  ;;  %v1158_v28 = vadd.f32 %v1155_v3, %v1113_v18  ;;  %v1143_v32 = vadd.f32 %v1140_v44, %v1098_v48  ;;  %v1128_v37 = vadd.f32 %v1125_v25, %v1083_v14 }
 0x1fc   :  { %v1192_v43 = vadd.f32 %v1190_v53, %v1158_v28  ;;  %v1197_v31 = vadd.f32 %v1195_v59, %v2731_v0 }
 0x1fe   :  { %v1196_v22 = vadd.f32 %v1195_v59, %v1192_v43  ;;  %v1280_v16 = vperm.slane %v1197_v31, %v2636_v34  ;;  %v1276_v36 = vrot.slane %v1197_v31, 1 }
 0x1ff   :  { %v1182_v20 = vpop.permute.xlu1 %1181 }
 0x200   :  { %v1199_v55 = vrot.slane %v1196_v22, 1  ;;  %v1207_v35 = vperm.slane %v1196_v22, %v2636_v34  ;;  %v1185_v49 = vsel %vm410_vm8, %v1182_v20, %v3365_v39  ;;  %v1169_v9 = vpop.permute.xlu0 %1168  ;;  %1202 = vst.msk [vmem:[%s3252_s3] sm:$0x1] %vm1201_vm9, %v1196_v22  ;;  %v1284_v3 = vperm.slane %v1276_v36, %v2636_v34 }
 0x201   :  { %v1188_v38 = vadd.f32 %v1185_v49, %v1143_v32  ;;  %v1170_v15 = vsel %vm410_vm8, %v3367_v7, %v1169_v9  ;;  %v1174_v10 = vadd.f32 %v1169_v9, %v2678_v17  ;;  %v3369_v17 = vstv %s2595_s7 }
 0x202   :  { %v1211_v45 = vperm.slane %v1199_v55, %v2636_v34  ;;  %v1173_v42 = vadd.f32 %v1170_v15, %v1128_v37  ;;  %1221 = vrot.lane.b32.xlu2 %v1207_v35, %s1771_s12  ;;  %1212 = vrot.lane.b32.xlu0 %v1207_v35, %s1763_s28  ;;  %1203 = vst.msk [vmem:[%s3252_s3 + $0x8] sm:$0x1] %vm1201_vm9, %v1199_v55  ;;  %vm1333_vm8 = vcmask 434496  }
 0x203   :  { %v1486_v1 = vadd.f32 %v1484_v2, %v1188_v38  ;;  %v1348_v6 = vadd.f32 %v3368_v8, %v1174_v10 }
 0x204   :  { %v1347_v56 = vadd.f32 %v1345_v23, %v1173_v42  ;;  %1214 = vrot.lane.b32.xlu1 %v1211_v45, %s1763_s28 }
 0x205   :  { %v1490_v29 = vadd.f32 %v3369_v17, %v1486_v1  ;;  %v1352_v24 = vadd.f32 %v1350_v5, %v1348_v6 }
 0x206   :  { %v1351_v52 = vadd.f32 %v1350_v5, %v1347_v56 }
 0x207   :  { %v1493_v61 = vrot.slane %v1490_v29, 1  ;;  %v2774_v33 = vperm.slane %v1490_v29, %v2636_v34  ;;  %v1423_v54 = vrot.slane %v1352_v24, 1  ;;  %v2777_v58 = vperm.slane %v1352_v24, %v2636_v34  ;;  %1495 = vst.msk [vmem:[%s3252_s3 + $0x2] sm:$0x1] %vm1201_vm9, %v1490_v29 }
 0x208   :  { %v1354_v27 = vrot.slane %v1351_v52, 1  ;;  %v1361_v18 = vperm.slane %v1351_v52, %v2636_v34  ;;  %1356 = vst.msk [vmem:[%s3252_s3 + $0x1] sm:$0x1] %vm1201_vm9, %v1351_v52 }
 0x209   :  { %v2789_v51 = vperm.slane %v1493_v61, %v2636_v34  ;;  %v2792_v21 = vperm.slane %v1423_v54, %v2636_v34  ;;  %1496 = vst.msk [vmem:[%s3252_s3 + $0xa] sm:$0x1] %vm1201_vm9, %v1493_v61 }
 0x20a   :  { %v1365_v13 = vperm.slane %v1354_v27, %v2636_v34  ;;  %1232 = vrot.lane.b32.xlu2 %v1211_v45, %s1772_s2  ;;  %1223 = vrot.lane.b32.xlu0 %v1211_v45, %s1771_s12  ;;  %1357 = vst.msk [vmem:[%s3252_s3 + $0x9] sm:$0x1] %vm1201_vm9, %v1354_v27  ;;  %vm1342_vm9 = vcmask 549296  }
 0x20c   :  { %1230 = vrot.lane.b32.xlu1 %v1207_v35, %s1772_s2 }
 0x212   :  { %1248 = vrot.lane.b32.xlu2 %v1207_v35, %s1773_s0  ;;  %1239 = vrot.lane.b32.xlu0 %v1207_v35, %s1774_s26 }
 0x214   :  { %1241 = vrot.lane.b32.xlu1 %v1211_v45, %s1774_s26 }
 0x21a   :  { %1259 = vrot.lane.b32.xlu2 %v1211_v45, %s1775_s27  ;;  %1250 = vrot.lane.b32.xlu0 %v1211_v45, %s1773_s0 }
 0x21c   :  { %1257 = vrot.lane.b32.xlu1 %v1207_v35, %s1775_s27 }
 0x222   :  { %1285 = vrot.lane.b32.xlu2 %v1280_v16, %s1764_s5  ;;  %1266 = vrot.lane.b32.xlu0 %v1207_v35, %s1776_s29 }
 0x224   :  { %1268 = vrot.lane.b32.xlu1 %v1211_v45, %s1776_s29 }
 0x22a   :  { %1296 = vrot.lane.b32.xlu2 %v1284_v3, %s1766_s13  ;;  %1287 = vrot.lane.b32.xlu0 %v1284_v3, %s1764_s5 }
 0x22c   :  { %1294 = vrot.lane.b32.xlu1 %v1280_v16, %s1766_s13 }
 0x232   :  { %1318 = vrot.lane.b32.xlu2 %v1280_v16, %s1777_s17  ;;  %1309 = vrot.lane.b32.xlu0 %v1280_v16, %s1778_s30 }
 0x234   :  { %1311 = vrot.lane.b32.xlu1 %v1284_v3, %s1778_s30 }
 0x23a   :  { %1329 = vrot.lane.b32.xlu2 %v1284_v3, %s1779_s4  ;;  %1320 = vrot.lane.b32.xlu0 %v1284_v3, %s1777_s17 }
 0x23c   :  { %1327 = vrot.lane.b32.xlu1 %v1280_v16, %s1779_s4 }
 0x242   :  { %1366 = vrot.lane.b32.xlu2 %v1361_v18, %s1763_s28  ;;  %1336 = vrot.lane.b32.xlu0 %v1280_v16, %s1780_s21 }
 0x244   :  { %1338 = vrot.lane.b32.xlu1 %v1284_v3, %s1780_s21 }
 0x24a   :  { %1376 = vrot.lane.b32.xlu2 %v1365_v13, %s1771_s12  ;;  %1368 = vrot.lane.b32.xlu0 %v1365_v13, %s1763_s28 }
 0x24c   :  { %1374 = vrot.lane.b32.xlu1 %v1361_v18, %s1771_s12 }
 0x252   :  { %1390 = vrot.lane.b32.xlu2 %v1361_v18, %s1774_s26  ;;  %1382 = vrot.lane.b32.xlu0 %v1361_v18, %s1772_s2 }
 0x254   :  { %1384 = vrot.lane.b32.xlu1 %v1365_v13, %s1772_s2 }
 0x25a   :  { %1400 = vrot.lane.b32.xlu2 %v1365_v13, %s1773_s0  ;;  %1392 = vrot.lane.b32.xlu0 %v1365_v13, %s1774_s26 }
 0x25c   :  { %v1222_v34 = vpop.permute.xlu2 %1221  ;;  %1398 = vrot.lane.b32.xlu1 %v1361_v18, %s1773_s0 }
 0x262   :  { %1414 = vrot.lane.b32.xlu2 %v1361_v18, %s1776_s29  ;;  %1406 = vrot.lane.b32.xlu0 %v1361_v18, %s1775_s27 }
 0x264   :  { %v1233_v53 = vpop.permute.xlu2 %1232  ;;  %1408 = vrot.lane.b32.xlu1 %v1365_v13, %s1775_s27 }
 0x26a   :  { %1434 = vrot.lane.b32.xlu2 %v2792_v21, %s1764_s5  ;;  %1416 = vrot.lane.b32.xlu0 %v1365_v13, %s1776_s29 }
 0x26c   :  { %v1249_v40 = vpop.permute.xlu2 %1248  ;;  %1432 = vrot.lane.b32.xlu1 %v2777_v58, %s1764_s5 }
 0x272   :  { %1452 = vrot.lane.b32.xlu2 %v2777_v58, %s1778_s30  ;;  %1440 = vrot.lane.b32.xlu0 %v2777_v58, %s1766_s13 }
 0x274   :  { %v1213_v0 = vpop.permute.xlu0 %1212  ;;  %v1260_v28 = vpop.permute.xlu2 %1259  ;;  %1442 = vrot.lane.b32.xlu1 %v2792_v21, %s1766_s13 }
 0x275   :  { %1219 = vst.msk [vmem:[%s3252_s3] sm:$0x1] %vm1218_vm10, %v1213_v0 }
 0x276   :  { %v1215_v46 = vpop.permute.xlu1 %1214  ;;  %1228 = vst.msk [vmem:[%s3252_s3] sm:$0x1] %vm1227_vm11, %v1222_v34 }
 0x277   :  { %1220 = vst.msk [vmem:[%s3252_s3 + $0x8] sm:$0x1] %vm1218_vm10, %v1215_v46 }
 0x27a   :  { %1462 = vrot.lane.b32.xlu2 %v2792_v21, %s1777_s17  ;;  %1454 = vrot.lane.b32.xlu0 %v2792_v21, %s1778_s30 }
 0x27c   :  { %v1286_v12 = vpop.permute.xlu2 %1285  ;;  %v1224_v50 = vpop.permute.xlu0 %1223  ;;  %1460 = vrot.lane.b32.xlu1 %v2777_v58, %s1777_s17 }
 0x27d   :  { %1229 = vst.msk [vmem:[%s3252_s3 + $0x8] sm:$0x1] %vm1227_vm11, %v1224_v50 }
 0x27e   :  { %v1231_v59 = vpop.permute.xlu1 %1230  ;;  %1238 = vst.msk [vmem:[%s3252_s3 + $0x8] sm:$0x1] %vm1236_vm12, %v1233_v53 }
 0x27f   :  { %1237 = vst.msk [vmem:[%s3252_s3] sm:$0x1] %vm1236_vm12, %v1231_v59 }
 0x282   :  { %1476 = vrot.lane.b32.xlu2 %v2777_v58, %s1780_s21  ;;  %1468 = vrot.lane.b32.xlu0 %v2777_v58, %s1779_s4 }
 0x284   :  { %v1297_v30 = vpop.permute.xlu2 %1296  ;;  %v1240_v19 = vpop.permute.xlu0 %1239  ;;  %1470 = vrot.lane.b32.xlu1 %v2792_v21, %s1779_s4 }
 0x285   :  { %1246 = vst.msk [vmem:[%s3252_s3] sm:$0x1] %vm1245_vm13, %v1240_v19  ;;  %v1299_v25 = vrot.slane %v1297_v30, 4 }
 0x286   :  { %v1242_v41 = vpop.permute.xlu1 %1241  ;;  %1255 = vst.msk [vmem:[%s3252_s3] sm:$0x1] %vm1254_vm14, %v1249_v40 }
 0x287   :  { %1247 = vst.msk [vmem:[%s3252_s3 + $0x8] sm:$0x1] %vm1245_vm13, %v1242_v41  ;;  %v1301_v4 = vsel %vm272_vm1, %v1299_v25, %v1297_v30 }
 0x28a   :  { %1507 = vrot.lane.b32.xlu2 %v2789_v51, %s1763_s28  ;;  %1478 = vrot.lane.b32.xlu0 %v2792_v21, %s1780_s21 }
 0x28c   :  { %v1319_v47 = vpop.permute.xlu2 %1318  ;;  %v1251_v44 = vpop.permute.xlu0 %1250  ;;  %1505 = vrot.lane.b32.xlu1 %v2774_v33, %s1763_s28 }
 0x28d   :  { %1256 = vst.msk [vmem:[%s3252_s3 + $0x8] sm:$0x1] %vm1254_vm14, %v1251_v44 }
 0x28e   :  { %v1258_v43 = vpop.permute.xlu1 %1257  ;;  %1265 = vst.msk [vmem:[%s3252_s3 + $0x8] sm:$0x1] %vm1263_vm15, %v1260_v28 }
 0x28f   :  { %1264 = vst.msk [vmem:[%s3252_s3] sm:$0x1] %vm1263_vm15, %v1258_v43 }
 0x292   :  { %1521 = vrot.lane.b32.xlu2 %v2774_v33, %s1772_s2  ;;  %1513 = vrot.lane.b32.xlu0 %v2774_v33, %s1771_s12 }
 0x294   :  { %v1330_v11 = vpop.permute.xlu2 %1329  ;;  %v1267_v48 = vpop.permute.xlu0 %1266  ;;  %1515 = vrot.lane.b32.xlu1 %v2789_v51, %s1771_s12 }
 0x295   :  { %1273 = vst.msk [vmem:[%s3252_s3] sm:$0x1] %vm1272_vm0, %v1267_v48 }
 0x296   :  { %1292 = vst.msk [vmem:[%s3252_s3] sm:$0x1] %vm1291_vm2, %v1286_v12  ;;  %v1269_v57 = vpop.permute.xlu1 %1268 }
 0x297   :  { %1274 = vst.msk [vmem:[%s3252_s3 + $0x8] sm:$0x1] %vm1272_vm0, %v1269_v57 }
 0x29a   :  { %1531 = vrot.lane.b32.xlu2 %v2789_v51, %s1774_s26  ;;  %1523 = vrot.lane.b32.xlu0 %v2789_v51, %s1772_s2 }
 0x29c   :  { %v1367_v14 = vpop.permute.xlu2 %1366  ;;  %v1288_v22 = vpop.permute.xlu0 %1287  ;;  %1529 = vrot.lane.b32.xlu1 %v2774_v33, %s1774_s26 }
 0x29d   :  { %1372 = vst.msk [vmem:[%s3252_s3 + $0x1] sm:$0x1] %vm1218_vm10, %v1367_v14 }
 0x29e   :  { %1293 = vst.msk [vmem:[%s3252_s3 + $0x8] sm:$0x1] %vm1291_vm2, %v1288_v22  ;;  %v1295_v2 = vpop.permute.xlu1 %1294 }
 0x29f   :  { %v1298_v32 = vrot.slane %v1295_v2, 4  ;;  %1308 = vst.msk [vmem:[%s3252_s3 + $0x8] sm:$0x11] %vm2945_vm5, %v1301_v4 }
 0x2a1   :  { %v1300_v20 = vsel %vm272_vm1, %v1298_v32, %v1295_v2 }
 0x2a2   :  { %1545 = vrot.lane.b32.xlu2 %v2774_v33, %s1775_s27  ;;  %1537 = vrot.lane.b32.xlu0 %v2774_v33, %s1773_s0  ;;  %1307 = vst.msk [vmem:[%s3252_s3] sm:$0x11] %vm2945_vm5, %v1300_v20 }
 0x2a4   :  { %v1377_v37 = vpop.permute.xlu2 %1376  ;;  %v1310_v55 = vpop.permute.xlu0 %1309  ;;  %1539 = vrot.lane.b32.xlu1 %v2789_v51, %s1773_s0 }
 0x2a5   :  { %1316 = vst.msk [vmem:[%s3252_s3 + $0x4] sm:$0x1] %vm1315_vm6, %v1310_v55 }
 0x2a6   :  { %v1312_v35 = vpop.permute.xlu1 %1311  ;;  %1325 = vst.msk [vmem:[%s3252_s3 + $0x4] sm:$0x1] %vm1324_vm7, %v1319_v47 }
 0x2a7   :  { %1317 = vst.msk [vmem:[%s3252_s3 + $0xc] sm:$0x1] %vm1315_vm6, %v1312_v35 }
 0x2aa   :  { %1581 = vrot.lane.b32.xlu2 %v2669_v62, %s1766_s13  ;;  %1547 = vrot.lane.b32.xlu0 %v2789_v51, %s1775_s27 }
 0x2ac   :  { %v1391_v39 = vpop.permute.xlu2 %1390  ;;  %v1321_v49 = vpop.permute.xlu0 %1320  ;;  %1579 = vrot.lane.b32.xlu1 %v2659_v63, %s1766_s13 }
 0x2ad   :  { %1326 = vst.msk [vmem:[%s3252_s3 + $0xc] sm:$0x1] %vm1324_vm7, %v1321_v49 }
 0x2ae   :  { %v1328_v9 = vpop.permute.xlu1 %1327  ;;  %1335 = vst.msk [vmem:[%s3252_s3 + $0xc] sm:$0x1] %vm1333_vm8, %v1330_v11 }
 0x2af   :  { %1334 = vst.msk [vmem:[%s3252_s3 + $0x4] sm:$0x1] %vm1333_vm8, %v1328_v9 }
 0x2b2   :  { %1571 = vrot.lane.b32.xlu2 %v2659_v63, %s1764_s5  ;;  %1553 = vrot.lane.b32.xlu0 %v2774_v33, %s1776_s29 }
 0x2b4   :  { %v1401_v60 = vpop.permute.xlu2 %1400  ;;  %v1337_v23 = vpop.permute.xlu0 %1336  ;;  %1555 = vrot.lane.b32.xlu1 %v2789_v51, %s1776_s29 }
 0x2b5   :  { %1343 = vst.msk [vmem:[%s3252_s3 + $0x4] sm:$0x1] %vm1342_vm9, %v1337_v23 }
 0x2b6   :  { %v1339_v38 = vpop.permute.xlu1 %1338 }
 0x2b7   :  { %1344 = vst.msk [vmem:[%s3252_s3 + $0xc] sm:$0x1] %vm1342_vm9, %v1339_v38 }
 0x2ba   :  { %1593 = vrot.lane.b32.xlu2 %v2669_v62, %s1778_s30  ;;  %1573 = vrot.lane.b32.xlu0 %v2669_v62, %s1764_s5 }
 0x2bc   :  { %v1415_v7 = vpop.permute.xlu2 %1414  ;;  %v1369_v15 = vpop.permute.xlu0 %1368  ;;  %1591 = vrot.lane.b32.xlu1 %v2659_v63, %s1778_s30 }
 0x2bd   :  { %1373 = vst.msk [vmem:[%s3252_s3 + $0x9] sm:$0x1] %vm1218_vm10, %v1369_v15 }
 0x2be   :  { %1381 = vst.msk [vmem:[%s3252_s3 + $0x9] sm:$0x1] %vm1227_vm11, %v1377_v37  ;;  %v1375_v10 = vpop.permute.xlu1 %1374 }
 0x2bf   :  { %1380 = vst.msk [vmem:[%s3252_s3 + $0x1] sm:$0x1] %vm1227_vm11, %v1375_v10 }
 0x2c2   :  { %1607 = vrot.lane.b32.xlu2 %v2659_v63, %s1779_s4  ;;  %1599 = vrot.lane.b32.xlu0 %v2659_v63, %s1777_s17 }
 0x2c4   :  { %v1435_v45 = vpop.permute.xlu2 %1434  ;;  %v1383_v5 = vpop.permute.xlu0 %1382  ;;  %1601 = vrot.lane.b32.xlu1 %v2669_v62, %s1777_s17 }
 0x2c5   :  { %1388 = vst.msk [vmem:[%s3252_s3 + $0x1] sm:$0x1] %vm1236_vm12, %v1383_v5 }
 0x2c6   :  { %1396 = vst.msk [vmem:[%s3252_s3 + $0x1] sm:$0x1] %vm1245_vm13, %v1391_v39  ;;  %v1385_v42 = vpop.permute.xlu1 %1384 }
 0x2c7   :  { %1389 = vst.msk [vmem:[%s3252_s3 + $0x9] sm:$0x1] %vm1236_vm12, %v1385_v42 }
 0x2ca   :  { %1617 = vrot.lane.b32.xlu2 %v2669_v62, %s1780_s21  ;;  %1609 = vrot.lane.b32.xlu0 %v2669_v62, %s1779_s4 }
 0x2cc   :  { %v1453_v1 = vpop.permute.xlu2 %1452  ;;  %v1393_v8 = vpop.permute.xlu0 %1392  ;;  %1615 = vrot.lane.b32.xlu1 %v2659_v63, %s1780_s21 }
 0x2cd   :  { %1397 = vst.msk [vmem:[%s3252_s3 + $0x9] sm:$0x1] %vm1245_vm13, %v1393_v8 }
 0x2ce   :  { %1405 = vst.msk [vmem:[%s3252_s3 + $0x9] sm:$0x1] %vm1254_vm14, %v1401_v60  ;;  %v1399_v6 = vpop.permute.xlu1 %1398 }
 0x2cf   :  { %1404 = vst.msk [vmem:[%s3252_s3 + $0x1] sm:$0x1] %vm1254_vm14, %v1399_v6 }
 0x2d4   :  { %v1463_v62 = vpop.permute.xlu2 %1462  ;;  %v1407_v56 = vpop.permute.xlu0 %1406 }
 0x2d5   :  { %1412 = vst.msk [vmem:[%s3252_s3 + $0x1] sm:$0x1] %vm1263_vm15, %v1407_v56 }
 0x2d6   :  { %1420 = vst.msk [vmem:[%s3252_s3 + $0x1] sm:$0x1] %vm1272_vm0, %v1415_v7  ;;  %v1409_v63 = vpop.permute.xlu1 %1408 }
 0x2d7   :  { %1413 = vst.msk [vmem:[%s3252_s3 + $0x9] sm:$0x1] %vm1263_vm15, %v1409_v63 }
 0x2dc   :  { %v1477_v17 = vpop.permute.xlu2 %1476  ;;  %v1417_v29 = vpop.permute.xlu0 %1416 }
 0x2dd   :  { %1421 = vst.msk [vmem:[%s3252_s3 + $0x9] sm:$0x1] %vm1272_vm0, %v1417_v29 }
 0x2de   :  { %1439 = vst.msk [vmem:[%s3252_s3 + $0x9] sm:$0x1] %vm1291_vm2, %v1435_v45  ;;  %v1433_v24 = vpop.permute.xlu1 %1432 }
 0x2df   :  { %1438 = vst.msk [vmem:[%s3252_s3 + $0x1] sm:$0x1] %vm1291_vm2, %v1433_v24 }
 0x2e4   :  { %v1508_v52 = vpop.permute.xlu2 %1507  ;;  %v1441_v61 = vpop.permute.xlu0 %1440 }
 0x2e5   :  { %1512 = vst.msk [vmem:[%s3252_s3 + $0xa] sm:$0x1] %vm1218_vm10, %v1508_v52  ;;  %v1444_v33 = vrot.slane %v1441_v61, 4 }
 0x2e6   :  { %v1443_v54 = vpop.permute.xlu1 %1442 }
 0x2e7   :  { %v1446_v58 = vsel %vm272_vm1, %v1444_v33, %v1441_v61  ;;  %v1445_v27 = vrot.slane %v1443_v54, 4 }
 0x2e8   :  { %1450 = vst.msk [vmem:[%s3252_s3 + $0x1] sm:$0x11] %vm2945_vm5, %v1446_v58 }
 0x2e9   :  { %1458 = vst.msk [vmem:[%s3252_s3 + $0x5] sm:$0x1] %vm1315_vm6, %v1453_v1  ;;  %v1447_v18 = vsel %vm272_vm1, %v1445_v27, %v1443_v54 }
 0x2ea   :  { %1451 = vst.msk [vmem:[%s3252_s3 + $0x9] sm:$0x11] %vm2945_vm5, %v1447_v18 }
 0x2ec   :  { %v1455_v51 = vpop.permute.xlu0 %1454  ;;  %v1522_v16 = vpop.permute.xlu2 %1521 }
 0x2ed   :  { %1459 = vst.msk [vmem:[%s3252_s3 + $0xd] sm:$0x1] %vm1315_vm6, %v1455_v51 }
 0x2ee   :  { %1467 = vst.msk [vmem:[%s3252_s3 + $0xd] sm:$0x1] %vm1324_vm7, %v1463_v62  ;;  %v1461_v21 = vpop.permute.xlu1 %1460 }
 0x2ef   :  { %1466 = vst.msk [vmem:[%s3252_s3 + $0x5] sm:$0x1] %vm1324_vm7, %v1461_v21 }
 0x2f4   :  { %v1469_v13 = vpop.permute.xlu0 %1468  ;;  %v1532_v34 = vpop.permute.xlu2 %1531 }
 0x2f5   :  { %1474 = vst.msk [vmem:[%s3252_s3 + $0x5] sm:$0x1] %vm1333_vm8, %v1469_v13 }
 0x2f6   :  { %1482 = vst.msk [vmem:[%s3252_s3 + $0x5] sm:$0x1] %vm1342_vm9, %v1477_v17  ;;  %v1471_v31 = vpop.permute.xlu1 %1470 }
 0x2f7   :  { %1475 = vst.msk [vmem:[%s3252_s3 + $0xd] sm:$0x1] %vm1333_vm8, %v1471_v31 }
 0x2fc   :  { %v1479_v36 = vpop.permute.xlu0 %1478  ;;  %v1546_v0 = vpop.permute.xlu2 %1545 }
 0x2fd   :  { %1483 = vst.msk [vmem:[%s3252_s3 + $0xd] sm:$0x1] %vm1342_vm9, %v1479_v36 }
 0x2fe   :  { %v1506_v3 = vpop.permute.xlu1 %1505 }
 0x2ff   :  { %1511 = vst.msk [vmem:[%s3252_s3 + $0x2] sm:$0x1] %vm1218_vm10, %v1506_v3 }
 0x304   :  { %v1514_v53 = vpop.permute.xlu0 %1513  ;;  %v1582_v50 = vpop.permute.xlu2 %1581 }
 0x305   :  { %1519 = vst.msk [vmem:[%s3252_s3 + $0x2] sm:$0x1] %vm1227_vm11, %v1514_v53  ;;  %v1584_v48 = vrot.slane %v1582_v50, 4 }
 0x306   :  { %1527 = vst.msk [vmem:[%s3252_s3 + $0x2] sm:$0x1] %vm1236_vm12, %v1522_v16  ;;  %v1516_v40 = vpop.permute.xlu1 %1515 }
 0x307   :  { %1520 = vst.msk [vmem:[%s3252_s3 + $0xa] sm:$0x1] %vm1227_vm11, %v1516_v40  ;;  %v1586_v14 = vsel %vm272_vm1, %v1584_v48, %v1582_v50 }
 0x30c   :  { %v1524_v28 = vpop.permute.xlu0 %1523  ;;  %v1572_v41 = vpop.permute.xlu2 %1571 }
 0x30d   :  { %1528 = vst.msk [vmem:[%s3252_s3 + $0xa] sm:$0x1] %vm1236_vm12, %v1524_v28 }
 0x30e   :  { %1536 = vst.msk [vmem:[%s3252_s3 + $0xa] sm:$0x1] %vm1245_vm13, %v1532_v34  ;;  %v1530_v46 = vpop.permute.xlu1 %1529 }
 0x30f   :  { %1535 = vst.msk [vmem:[%s3252_s3 + $0x2] sm:$0x1] %vm1245_vm13, %v1530_v46 }
 0x314   :  { %v1538_v12 = vpop.permute.xlu0 %1537  ;;  %v1594_v57 = vpop.permute.xlu2 %1593 }
 0x315   :  { %1543 = vst.msk [vmem:[%s3252_s3 + $0x2] sm:$0x1] %vm1254_vm14, %v1538_v12 }
 0x316   :  { %1551 = vst.msk [vmem:[%s3252_s3 + $0x2] sm:$0x1] %vm1263_vm15, %v1546_v0  ;;  %v1540_v59 = vpop.permute.xlu1 %1539 }
 0x317   :  { %1544 = vst.msk [vmem:[%s3252_s3 + $0xa] sm:$0x1] %vm1254_vm14, %v1540_v59 }
 0x31c   :  { %v1548_v30 = vpop.permute.xlu0 %1547  ;;  %v1608_v4 = vpop.permute.xlu2 %1607 }
 0x31d   :  { %1552 = vst.msk [vmem:[%s3252_s3 + $0xa] sm:$0x1] %vm1263_vm15, %v1548_v30 }
 0x31e   :  { %v1580_v19 = vpop.permute.xlu1 %1579 }
 0x31f   :  { %v1583_v47 = vrot.slane %v1580_v19, 4 }
 0x321   :  { %v1585_v43 = vsel %vm272_vm1, %v1583_v47, %v1580_v19 }
 0x324   :  { %v1554_v44 = vpop.permute.xlu0 %1553  ;;  %v1618_v20 = vpop.permute.xlu2 %1617 }
 0x325   :  { %1559 = vst.msk [vmem:[%s3252_s3 + $0x2] sm:$0x1] %vm1272_vm0, %v1554_v44 }
 0x326   :  { %1577 = vst.msk [vmem:[%s3252_s3 + $0x2] sm:$0x1] %vm1291_vm2, %v1572_v41  ;;  %v1556_v11 = vpop.permute.xlu1 %1555 }
 0x327   :  { %1589 = vst.msk [vmem:[%s3252_s3 + $0x2] sm:$0x11] %vm2945_vm5, %v1585_v43 }
 0x328   :  { %1560 = vst.msk [vmem:[%s3252_s3 + $0xa] sm:$0x1] %vm1272_vm0, %v1556_v11 }
 0x32c   :  { %v1574_v25 = vpop.permute.xlu0 %1573 }
 0x32d   :  { %1578 = vst.msk [vmem:[%s3252_s3 + $0xa] sm:$0x1] %vm1291_vm2, %v1574_v25 }
 0x32e   :  { %1590 = vst.msk [vmem:[%s3252_s3 + $0xa] sm:$0x11] %vm2945_vm5, %v1586_v14  ;;  %v1592_v22 = vpop.permute.xlu1 %1591 }
 0x32f   :  { %1598 = vst.msk [vmem:[%s3252_s3 + $0xe] sm:$0x1] %vm1315_vm6, %v1594_v57 }
 0x330   :  { %1597 = vst.msk [vmem:[%s3252_s3 + $0x6] sm:$0x1] %vm1315_vm6, %v1592_v22 }
 0x334   :  { %v1600_v2 = vpop.permute.xlu0 %1599 }
 0x335   :  { %1605 = vst.msk [vmem:[%s3252_s3 + $0x6] sm:$0x1] %vm1324_vm7, %v1600_v2 }
 0x336   :  { %1613 = vst.msk [vmem:[%s3252_s3 + $0x6] sm:$0x1] %vm1333_vm8, %v1608_v4  ;;  %v1602_v26 = vpop.permute.xlu1 %1601 }
 0x337   :  { %1606 = vst.msk [vmem:[%s3252_s3 + $0xe] sm:$0x1] %vm1324_vm7, %v1602_v26 }
 0x33c   :  { %v1610_v32 = vpop.permute.xlu0 %1609 }
 0x33d   :  { %1614 = vst.msk [vmem:[%s3252_s3 + $0xe] sm:$0x1] %vm1333_vm8, %v1610_v32 }
 0x33e   :  { %1622 = vst.msk [vmem:[%s3252_s3 + $0xe] sm:$0x1] %vm1342_vm9, %v1618_v20  ;;  %v1616_v37 = vpop.permute.xlu1 %1615 }
 0x33f   :  { %1621 = vst.msk [vmem:[%s3252_s3 + $0x6] sm:$0x1] %vm1342_vm9, %v1616_v37 }
 0x340   :  { %1627 = vsyncpa [#allocation3], 1 }
 0x341   :  { %1628 = vsyncpa [#allocation5], 1 }

</bundles_post_ra>
